<compile_context>
chip_gen: v6e
topology: v6e:2x2x1
jax: 0.10.0
libtpu: 0.0.40
codegen_flags: <defaults>
</compile_context>

<pallas_src>
import functools

import jax
import jax.numpy as jnp
from jax.experimental import pallas as pl
from jax.experimental.pallas import tpu as pltpu

OP_SPACE = 19
PROB_SPACE = 11
MAG_SPACE = 10
HIDDEN = 100
INPUT_UNITS = 5 * (OP_SPACE + 2 * PROB_SPACE + 2 * MAG_SPACE)  # 305
OP_OUT = 5 * OP_SPACE            # 95
PROB_OUT = 5 * PROB_SPACE * 2    # 110
MAG_OUT = 5 * MAG_SPACE * 2      # 100
HEAD_N = OP_OUT + PROB_OUT + MAG_OUT          # 305
HEAD_N_PAD = 384                              # 3 * 128, lane-dense head output

GP = 128                 # gate width: HIDDEN (100) padded to one vreg lane tile
GATES = 4 * GP           # 512
K_PAD = 384              # input-units contraction dim padded 305 -> 384 (lane aligned)
TC_MAX = 32              # max time steps per grid iteration of the fused kernel


# ----------------------------------------------------------------------------
# Fused kernel: input projection + TC recurrent steps + output heads per chunk.
# ----------------------------------------------------------------------------
def _make_fused_kernel(tc):
    def kernel(x_ref, wih_ref, bias_ref, whh_ref, whd_ref, bhd_ref,
               heads_ref, h_sc, c_sc, xw_sc, hall_sc):
        @pl.when(pl.program_id(0) == 0)
        def _():
            h_sc[...] = jnp.zeros_like(h_sc)
            c_sc[...] = jnp.zeros_like(c_sc)

        # (1) Input projection for this time chunk (bias folded in), off the
        #     serial critical path of the per-step recurrence.
        xw_sc[...] = (
            jnp.dot(x_ref[...], wih_ref[...], preferred_element_type=jnp.float32)
            + bias_ref[...]
        )

        # Gate-activation fusion constants (hoisted out of the unrolled loop).
        # sigmoid(x) == 0.5 * (tanh(0.5 * x) + 1): pre-scale i/f/o lanes by 0.5,
        # run ONE 512-wide tanh (single EUP pass), fix up sigmoid on the VPU.
        lane = jax.lax.broadcasted_iota(jnp.int32, (1, GATES), 1)
        is_g = jnp.logical_and(lane >= 2 * GP, lane < 3 * GP)
        pre_scale = jnp.where(is_g, 1.0, 0.5).astype(jnp.float32)

        # (2) Serial recurrence.  h/c are loop-carried values (registers) across
        #     the unrolled steps; only h_t is stored per step (lane-dense row).
        def step(t, carry):
            h, c = carry
            gates = xw_sc[pl.ds(t, 1), :] + jnp.dot(
                h, whh_ref[...], preferred_element_type=jnp.float32)
            th = jnp.tanh(gates * pre_scale)                 # one EUP pass, 512 wide
            act = jnp.where(is_g, th, 0.5 * (th + 1.0))      # sigmoid fixup (VPU)
            # PyTorch gate order [i, f, g, o]; each slice is one 128-lane tile.
            i_g = act[:, 0 * GP:1 * GP]
            f_g = act[:, 1 * GP:2 * GP]
            g_g = act[:, 2 * GP:3 * GP]
            o_g = act[:, 3 * GP:4 * GP]
            c_new = f_g * c + i_g * g_g
            h_new = o_g * jnp.tanh(c_new)
            hall_sc[pl.ds(t, 1), :] = h_new
            return (h_new, c_new)

        h_f, c_f = jax.lax.fori_loop(
            0, tc, step, (h_sc[...], c_sc[...]), unroll=True)
        h_sc[...] = h_f        # spill carry to persistent scratch once per chunk
        c_sc[...] = c_f

        # (3) Output heads for this chunk: one lane-dense (tc,128)x(128,384) matmul.
        heads_ref[...] = (
            jnp.dot(hall_sc[...], whd_ref[...], preferred_element_type=jnp.float32)
            + bhd_ref[...]
        )

    return kernel


def _fused_forward(x_pad, wih_pad, bias_pad, whh_pad, w_heads, b_heads, tc):
    t_pad = x_pad.shape[0]
    return pl.pallas_call(
        _make_fused_kernel(tc),
        out_shape=jax.ShapeDtypeStruct((t_pad, HEAD_N_PAD), jnp.float32),
        grid_spec=pltpu.PrefetchScalarGridSpec(
            num_scalar_prefetch=0,
            grid=(t_pad // tc,),
            in_specs=[
                pl.BlockSpec((tc, K_PAD), lambda i: (i, 0)),         # x chunk
                pl.BlockSpec((K_PAD, GATES), lambda i: (0, 0)),      # W_ih (resident)
                pl.BlockSpec((1, GATES), lambda i: (0, 0)),          # b_ih + b_hh
                pl.BlockSpec((GP, GATES), lambda i: (0, 0)),         # W_hh (resident)
                pl.BlockSpec((GP, HEAD_N_PAD), lambda i: (0, 0)),    # W_heads (resident)
                pl.BlockSpec((1, HEAD_N_PAD), lambda i: (0, 0)),     # b_heads
            ],
            out_specs=pl.BlockSpec((tc, HEAD_N_PAD), lambda i: (i, 0)),
            scratch_shapes=[
                pltpu.VMEM((1, GP), jnp.float32),       # h_t (persists across chunks)
                pltpu.VMEM((1, GP), jnp.float32),       # c_t (persists across chunks)
                pltpu.VMEM((tc, GATES), jnp.float32),   # xw for this chunk
                pltpu.VMEM((tc, GP), jnp.float32),      # h rows for heads matmul
            ],
        ),
        compiler_params=pltpu.CompilerParams(
            dimension_semantics=("arbitrary",),  # serial recurrence over time chunks
        ),
    )(x_pad, wih_pad, bias_pad, whh_pad, w_heads, b_heads)


# ----------------------------------------------------------------------------
# Wrapper
# ----------------------------------------------------------------------------
def _pad_gate_cols(w):
    """Rearrange (..., 4*HIDDEN) -> (..., 4*GP): each 100-wide gate zero-padded to 128."""
    parts = []
    for g in range(4):
        blk = w[..., g * HIDDEN:(g + 1) * HIDDEN]
        pad = [(0, 0)] * (w.ndim - 1) + [(0, GP - HIDDEN)]
        parts.append(jnp.pad(blk, pad))
    return jnp.concatenate(parts, axis=-1)


@jax.jit
def lstm_controller_forward(x, params):
    """x: (T, 1, INPUT_UNITS) float32. Returns (op, prob, mag) = (T,95),(T,110),(T,100)."""
    T = x.shape[0]
    assert x.shape[1] == 1 and x.shape[2] == INPUT_UNITS
    x2d = x.reshape(T, INPUT_UNITS)

    # Time-chunk size: multiple of 8, capped at TC_MAX (static under jit).
    tc = min(TC_MAX, -(-T // 8) * 8)
    t_pad = -(-T // tc) * tc
    x_pad = jnp.pad(x2d, ((0, t_pad - T), (0, K_PAD - INPUT_UNITS)))   # (T_pad, 384)

    # --- weight preparation (gate layout 4x128, HIDDEN padded to 128) ---
    wih_pad = _pad_gate_cols(params["w_ih"].T)                          # (305, 512)
    wih_pad = jnp.pad(wih_pad, ((0, K_PAD - INPUT_UNITS), (0, 0)))      # (384, 512)
    bias_pad = _pad_gate_cols(
        (params["b_ih"] + params["b_hh"]).reshape(1, 4 * HIDDEN))       # (1, 512)
    whh_pad = _pad_gate_cols(params["w_hh"].T)                          # (100, 512)
    whh_pad = jnp.pad(whh_pad, ((0, GP - HIDDEN), (0, 0)))              # (128, 512)

    w_heads = jnp.concatenate(
        [params["w_op"].T, params["w_prob"].T, params["w_mag"].T], axis=1)    # (100, 305)
    w_heads = jnp.pad(w_heads, ((0, GP - HIDDEN), (0, HEAD_N_PAD - HEAD_N)))  # (128, 384)
    b_heads = jnp.concatenate(
        [params["b_op"], params["b_prob"], params["b_mag"]]).reshape(1, HEAD_N)
    b_heads = jnp.pad(b_heads, ((0, 0), (0, HEAD_N_PAD - HEAD_N)))            # (1, 384)

    heads = _fused_forward(x_pad, wih_pad, bias_pad, whh_pad, w_heads, b_heads, tc)

    op = heads[:T, :OP_OUT]
    prob = heads[:T, OP_OUT:OP_OUT + PROB_OUT]
    mag = heads[:T, OP_OUT + PROB_OUT:HEAD_N]
    return op, prob, mag


# ----------------------------------------------------------------------------
# Pure-JAX reference (lax.scan), matches torch.nn.LSTM + Linear heads.
# ----------------------------------------------------------------------------
def _reference_forward(x, params):
    wih, whh = params["w_ih"], params["w_hh"]
    b = params["b_ih"] + params["b_hh"]

    def step(carry, xt):
        h, c = carry                                 # (1, HIDDEN)
        gates = xt @ wih.T + h @ whh.T + b           # (1, 4H)
        i = jax.nn.sigmoid(gates[:, 0 * HIDDEN:1 * HIDDEN])
        f = jax.nn.sigmoid(gates[:, 1 * HIDDEN:2 * HIDDEN])
        g = jnp.tanh(gates[:, 2 * HIDDEN:3 * HIDDEN])
        o = jax.nn.sigmoid(gates[:, 3 * HIDDEN:4 * HIDDEN])
        c_new = f * c + i * g
        h_new = o * jnp.tanh(c_new)
        return (h_new, c_new), h_new

    h0 = jnp.zeros((1, HIDDEN), jnp.float32)
    c0 = jnp.zeros((1, HIDDEN), jnp.float32)
    _, hs = jax.lax.scan(step, (h0, c0), x)          # hs: (T, 1, HIDDEN)
    hflat = hs.reshape(-1, HIDDEN)                   # Flatten (B=1)
    op = hflat @ params["w_op"].T + params["b_op"]
    prob = hflat @ params["w_prob"].T + params["b_prob"]
    mag = hflat @ params["w_mag"].T + params["b_mag"]
    return op, prob, mag


def _init_params(key):
    k = 1.0 / jnp.sqrt(jnp.float32(HIDDEN))
    keys = jax.random.split(key, 10)
    u = lambda kk, shape, bound: jax.random.uniform(kk, shape, jnp.float32, -bound, bound)
    return {
        "w_ih": u(keys[0], (4 * HIDDEN, INPUT_UNITS), k),
        "w_hh": u(keys[1], (4 * HIDDEN, HIDDEN), k),
        "b_ih": u(keys[2], (4 * HIDDEN,), k),
        "b_hh": u(keys[3], (4 * HIDDEN,), k),
        "w_op": u(keys[4], (OP_OUT, HIDDEN), k),
        "b_op": u(keys[5], (OP_OUT,), k),
        "w_prob": u(keys[6], (PROB_OUT, HIDDEN), k),
        "b_prob": u(keys[7], (PROB_OUT,), k),
        "w_mag": u(keys[8], (MAG_OUT, HIDDEN), k),
        "b_mag": u(keys[9], (MAG_OUT,), k),
    }


if __name__ == "__main__":
    key = jax.random.PRNGKey(0)
    pkey, xkey = jax.random.split(key)
    params = _init_params(pkey)

    T = 8  # sequence length; batch = 1 (required by the module's Flatten+Linear heads)
    x = jax.random.normal(xkey, (T, 1, INPUT_UNITS), jnp.float32)

    op, prob, mag = lstm_controller_forward(x, params)
    jax.block_until_ready((op, prob, mag))

    op_r, prob_r, mag_r = _reference_forward(x, params)
    assert op.shape == (T, OP_OUT) and prob.shape == (T, PROB_OUT) and mag.shape == (T, MAG_OUT)
    assert jnp.allclose(op, op_r, atol=1e-4), "op head mismatch"
    assert jnp.allclose(prob, prob_r, atol=1e-4), "prob head mismatch"
    assert jnp.allclose(mag, mag_r, atol=1e-4), "mag head mismatch"

    print("KERNEL_OK")
</pallas_src>

<mosaic_0001>
module attributes {stable_mosaic.version = 11 : i64} {
  func.func @kernel(%arg0: i32, %arg1: memref<8x384xf32, #tpu.memory_space<vmem>>, %arg2: memref<384x512xf32, #tpu.memory_space<vmem>>, %arg3: memref<1x512xf32, #tpu.memory_space<vmem>>, %arg4: memref<128x512xf32, #tpu.memory_space<vmem>>, %arg5: memref<128x384xf32, #tpu.memory_space<vmem>>, %arg6: memref<1x384xf32, #tpu.memory_space<vmem>>, %arg7: memref<8x384xf32, #tpu.memory_space<vmem>>, %arg8: memref<1x128xf32, #tpu.memory_space<vmem>>, %arg9: memref<1x128xf32, #tpu.memory_space<vmem>>, %arg10: memref<8x512xf32, #tpu.memory_space<vmem>>, %arg11: memref<8x128xf32, #tpu.memory_space<vmem>>) attributes {dimension_semantics = [#tpu.dimension_semantics<arbitrary>], iteration_bounds = array<i64: 1>, scalar_prefetch = 0 : i64, scratch_operands = 4 : i64, tpu.core_type = #tpu.core_type<tc>, window_params = [{transform_indices = @transform_0, window_bounds = array<i64: 8, 384>}, {pipeline_mode = #tpu.pipeline_mode<synchronous>, transform_indices = @transform_1, window_bounds = array<i64: 384, 512>}, {pipeline_mode = #tpu.pipeline_mode<synchronous>, transform_indices = @transform_2, window_bounds = array<i64: 1, 512>}, {pipeline_mode = #tpu.pipeline_mode<synchronous>, transform_indices = @transform_3, window_bounds = array<i64: 128, 512>}, {pipeline_mode = #tpu.pipeline_mode<synchronous>, transform_indices = @transform_4, window_bounds = array<i64: 128, 384>}, {pipeline_mode = #tpu.pipeline_mode<synchronous>, transform_indices = @transform_5, window_bounds = array<i64: 1, 384>}, {transform_indices = @transform_6, window_bounds = array<i64: 8, 384>}]} {
    %c0_i32 = arith.constant 0 : i32
    %0 = arith.cmpi eq, %arg0, %c0_i32 : i32
    %1 = arith.extui %0 : i1 to i32
    %c0_i32_0 = arith.constant 0 : i32
    %2 = arith.cmpi ne, %1, %c0_i32_0 : i32
    scf.if %2 {
      %cst_84 = arith.constant 0.000000e+00 : f32
      %214 = vector.broadcast %cst_84 : f32 to vector<1x128xf32>
      %c0_85 = arith.constant 0 : index
      %c0_86 = arith.constant 0 : index
      %215 = vector.load %arg8[%c0_85, %c0_86] : memref<1x128xf32, #tpu.memory_space<vmem>>, vector<1x128xf32>
      tpu.vector_store %arg8[%c0_85, %c0_86], %214 {strides = array<i32>} : memref<1x128xf32, #tpu.memory_space<vmem>>, vector<1x128xf32>,
      %cst_87 = arith.constant 0.000000e+00 : f32
      %216 = vector.broadcast %cst_87 : f32 to vector<1x128xf32>
      %c0_88 = arith.constant 0 : index
      %c0_89 = arith.constant 0 : index
      %217 = vector.load %arg9[%c0_88, %c0_89] : memref<1x128xf32, #tpu.memory_space<vmem>>, vector<1x128xf32>
      tpu.vector_store %arg9[%c0_88, %c0_89], %216 {strides = array<i32>} : memref<1x128xf32, #tpu.memory_space<vmem>>, vector<1x128xf32>,
    } else {
    }
    %c0 = arith.constant 0 : index
    %c0_1 = arith.constant 0 : index
    %3 = vector.load %arg1[%c0, %c0_1] : memref<8x384xf32, #tpu.memory_space<vmem>>, vector<8x384xf32>
    %c0_2 = arith.constant 0 : index
    %c0_3 = arith.constant 0 : index
    %4 = vector.load %arg2[%c0_2, %c0_3] : memref<384x512xf32, #tpu.memory_space<vmem>>, vector<384x512xf32>
    %cst = arith.constant dense<0.000000e+00> : vector<8x512xf32>
    %5 = tpu.matmul %3, %4, %cst {dimension_numbers = #tpu.dot_dimension_numbers<[1], [0], [0], [1], [0, 0, 1, 1], [], []>} : vector<8x384xf32>, vector<384x512xf32>, vector<8x512xf32> -> vector<8x512xf32>
    %c0_4 = arith.constant 0 : index
    %c0_5 = arith.constant 0 : index
    %6 = vector.load %arg3[%c0_4, %c0_5] : memref<1x512xf32, #tpu.memory_space<vmem>>, vector<1x512xf32>
    %7 = vector.broadcast %6 : vector<1x512xf32> to vector<8x512xf32>
    %8 = arith.addf %5, %7 : vector<8x512xf32>
    %c0_6 = arith.constant 0 : index
    %c0_7 = arith.constant 0 : index
    %9 = vector.load %arg10[%c0_6, %c0_7] : memref<8x512xf32, #tpu.memory_space<vmem>>, vector<8x512xf32>
    tpu.vector_store %arg10[%c0_6, %c0_7], %8 {strides = array<i32>} : memref<8x512xf32, #tpu.memory_space<vmem>>, vector<8x512xf32>,
    %10 = tpu.iota {dimensions = array<i32: 1>} : vector<1x512xi32>
    %c256_i32 = arith.constant 256 : i32
    %11 = vector.broadcast %c256_i32 : i32 to vector<1x512xi32>
    %12 = arith.cmpi sge, %10, %11 : vector<1x512xi32>
    %c384_i32 = arith.constant 384 : i32
    %13 = vector.broadcast %c384_i32 : i32 to vector<1x512xi32>
    %14 = arith.cmpi slt, %10, %13 : vector<1x512xi32>
    %15 = arith.andi %12, %14 : vector<1x512xi1>
    %cst_8 = arith.constant 1.000000e+00 : f32
    %cst_9 = arith.constant 5.000000e-01 : f32
    %16 = vector.broadcast %cst_8 : f32 to vector<1x512xf32>
    %17 = vector.broadcast %cst_9 : f32 to vector<1x512xf32>
    %18 = arith.select %15, %16, %17 : vector<1x512xi1>, vector<1x512xf32>
    %c0_10 = arith.constant 0 : index
    %c0_11 = arith.constant 0 : index
    %19 = vector.load %arg8[%c0_10, %c0_11] : memref<1x128xf32, #tpu.memory_space<vmem>>, vector<1x128xf32>
    %c0_12 = arith.constant 0 : index
    %c0_13 = arith.constant 0 : index
    %20 = vector.load %arg9[%c0_12, %c0_13] : memref<1x128xf32, #tpu.memory_space<vmem>>, vector<1x128xf32>
    %c0_i32_14 = arith.constant 0 : i32
    %21 = arith.index_cast %c0_i32_14 : i32 to index
    %c0_15 = arith.constant 0 : index
    %22 = vector.load %arg10[%21, %c0_15] : memref<8x512xf32, #tpu.memory_space<vmem>>, vector<1x512xf32>
    %c0_16 = arith.constant 0 : index
    %c0_17 = arith.constant 0 : index
    %23 = vector.load %arg4[%c0_16, %c0_17] : memref<128x512xf32, #tpu.memory_space<vmem>>, vector<128x512xf32>
    %cst_18 = arith.constant dense<0.000000e+00> : vector<1x512xf32>
    %24 = tpu.matmul %19, %23, %cst_18 {dimension_numbers = #tpu.dot_dimension_numbers<[1], [0], [0], [1], [0, 0, 1, 1], [], []>} : vector<1x128xf32>, vector<128x512xf32>, vector<1x512xf32> -> vector<1x512xf32>
    %25 = arith.addf %22, %24 : vector<1x512xf32>
    %26 = arith.mulf %25, %18 : vector<1x512xf32>
    %27 = math.tanh %26 : vector<1x512xf32>
    %cst_19 = arith.constant 1.000000e+00 : f32
    %28 = vector.broadcast %cst_19 : f32 to vector<1x512xf32>
    %29 = arith.addf %27, %28 : vector<1x512xf32>
    %cst_20 = arith.constant 5.000000e-01 : f32
    %30 = vector.broadcast %cst_20 : f32 to vector<1x512xf32>
    %31 = arith.mulf %30, %29 : vector<1x512xf32>
    %32 = arith.select %15, %27, %31 : vector<1x512xi1>, vector<1x512xf32>
    %33 = vector.extract_strided_slice %32 {offsets = [0, 0], sizes = [1, 128], strides = [1, 1]} : vector<1x512xf32> to vector<1x128xf32>
    %34 = vector.extract_strided_slice %32 {offsets = [0, 128], sizes = [1, 128], strides = [1, 1]} : vector<1x512xf32> to vector<1x128xf32>
    %35 = vector.extract_strided_slice %32 {offsets = [0, 256], sizes = [1, 128], strides = [1, 1]} : vector<1x512xf32> to vector<1x128xf32>
    %36 = vector.extract_strided_slice %32 {offsets = [0, 384], sizes = [1, 128], strides = [1, 1]} : vector<1x512xf32> to vector<1x128xf32>
    %37 = arith.mulf %34, %20 : vector<1x128xf32>
    %38 = arith.mulf %33, %35 : vector<1x128xf32>
    %39 = arith.addf %37, %38 : vector<1x128xf32>
    %40 = math.tanh %39 : vector<1x128xf32>
    %41 = arith.mulf %36, %40 : vector<1x128xf32>
    %42 = arith.index_cast %c0_i32_14 : i32 to index
    %c0_21 = arith.constant 0 : index
    %43 = vector.load %arg11[%42, %c0_21] : memref<8x128xf32, #tpu.memory_space<vmem>>, vector<1x128xf32>
    tpu.vector_store %arg11[%42, %c0_21], %41 {strides = array<i32>} : memref<8x128xf32, #tpu.memory_space<vmem>>, vector<1x128xf32>,
    %c1_i32 = arith.constant 1 : i32
    %44 = arith.index_cast %c1_i32 : i32 to index
    %c0_22 = arith.constant 0 : index
    %45 = vector.load %arg10[%44, %c0_22] : memref<8x512xf32, #tpu.memory_space<vmem>>, vector<1x512xf32>
    %c0_23 = arith.constant 0 : index
    %c0_24 = arith.constant 0 : index
    %46 = vector.load %arg4[%c0_23, %c0_24] : memref<128x512xf32, #tpu.memory_space<vmem>>, vector<128x512xf32>
    %cst_25 = arith.constant dense<0.000000e+00> : vector<1x512xf32>
    %47 = tpu.matmul %41, %46, %cst_25 {dimension_numbers = #tpu.dot_dimension_numbers<[1], [0], [0], [1], [0, 0, 1, 1], [], []>} : vector<1x128xf32>, vector<128x512xf32>, vector<1x512xf32> -> vector<1x512xf32>
    %48 = arith.addf %45, %47 : vector<1x512xf32>
    %49 = arith.mulf %48, %18 : vector<1x512xf32>
    %50 = math.tanh %49 : vector<1x512xf32>
    %cst_26 = arith.constant 1.000000e+00 : f32
    %51 = vector.broadcast %cst_26 : f32 to vector<1x512xf32>
    %52 = arith.addf %50, %51 : vector<1x512xf32>
    %cst_27 = arith.constant 5.000000e-01 : f32
    %53 = vector.broadcast %cst_27 : f32 to vector<1x512xf32>
    %54 = arith.mulf %53, %52 : vector<1x512xf32>
    %55 = arith.select %15, %50, %54 : vector<1x512xi1>, vector<1x512xf32>
    %56 = vector.extract_strided_slice %55 {offsets = [0, 0], sizes = [1, 128], strides = [1, 1]} : vector<1x512xf32> to vector<1x128xf32>
    %57 = vector.extract_strided_slice %55 {offsets = [0, 128], sizes = [1, 128], strides = [1, 1]} : vector<1x512xf32> to vector<1x128xf32>
    %58 = vector.extract_strided_slice %55 {offsets = [0, 256], sizes = [1, 128], strides = [1, 1]} : vector<1x512xf32> to vector<1x128xf32>
    %59 = vector.extract_strided_slice %55 {offsets = [0, 384], sizes = [1, 128], strides = [1, 1]} : vector<1x512xf32> to vector<1x128xf32>
    %60 = arith.mulf %57, %39 : vector<1x128xf32>
    %61 = arith.mulf %56, %58 : vector<1x128xf32>
    %62 = arith.addf %60, %61 : vector<1x128xf32>
    %63 = math.tanh %62 : vector<1x128xf32>
    %64 = arith.mulf %59, %63 : vector<1x128xf32>
    %65 = arith.index_cast %c1_i32 : i32 to index
    %c0_28 = arith.constant 0 : index
    %66 = vector.load %arg11[%65, %c0_28] : memref<8x128xf32, #tpu.memory_space<vmem>>, vector<1x128xf32>
    tpu.vector_store %arg11[%65, %c0_28], %64 {strides = array<i32>} : memref<8x128xf32, #tpu.memory_space<vmem>>, vector<1x128xf32>,
    %c2_i32 = arith.constant 2 : i32
    %67 = arith.index_cast %c2_i32 : i32 to index
    %c0_29 = arith.constant 0 : index
    %68 = vector.load %arg10[%67, %c0_29] : memref<8x512xf32, #tpu.memory_space<vmem>>, vector<1x512xf32>
    %c0_30 = arith.constant 0 : index
    %c0_31 = arith.constant 0 : index
    %69 = vector.load %arg4[%c0_30, %c0_31] : memref<128x512xf32, #tpu.memory_space<vmem>>, vector<128x512xf32>
    %cst_32 = arith.constant dense<0.000000e+00> : vector<1x512xf32>
    %70 = tpu.matmul %64, %69, %cst_32 {dimension_numbers = #tpu.dot_dimension_numbers<[1], [0], [0], [1], [0, 0, 1, 1], [], []>} : vector<1x128xf32>, vector<128x512xf32>, vector<1x512xf32> -> vector<1x512xf32>
    %71 = arith.addf %68, %70 : vector<1x512xf32>
    %72 = arith.mulf %71, %18 : vector<1x512xf32>
    %73 = math.tanh %72 : vector<1x512xf32>
    %cst_33 = arith.constant 1.000000e+00 : f32
    %74 = vector.broadcast %cst_33 : f32 to vector<1x512xf32>
    %75 = arith.addf %73, %74 : vector<1x512xf32>
    %cst_34 = arith.constant 5.000000e-01 : f32
    %76 = vector.broadcast %cst_34 : f32 to vector<1x512xf32>
    %77 = arith.mulf %76, %75 : vector<1x512xf32>
    %78 = arith.select %15, %73, %77 : vector<1x512xi1>, vector<1x512xf32>
    %79 = vector.extract_strided_slice %78 {offsets = [0, 0], sizes = [1, 128], strides = [1, 1]} : vector<1x512xf32> to vector<1x128xf32>
    %80 = vector.extract_strided_slice %78 {offsets = [0, 128], sizes = [1, 128], strides = [1, 1]} : vector<1x512xf32> to vector<1x128xf32>
    %81 = vector.extract_strided_slice %78 {offsets = [0, 256], sizes = [1, 128], strides = [1, 1]} : vector<1x512xf32> to vector<1x128xf32>
    %82 = vector.extract_strided_slice %78 {offsets = [0, 384], sizes = [1, 128], strides = [1, 1]} : vector<1x512xf32> to vector<1x128xf32>
    %83 = arith.mulf %80, %62 : vector<1x128xf32>
    %84 = arith.mulf %79, %81 : vector<1x128xf32>
    %85 = arith.addf %83, %84 : vector<1x128xf32>
    %86 = math.tanh %85 : vector<1x128xf32>
    %87 = arith.mulf %82, %86 : vector<1x128xf32>
    %88 = arith.index_cast %c2_i32 : i32 to index
    %c0_35 = arith.constant 0 : index
    %89 = vector.load %arg11[%88, %c0_35] : memref<8x128xf32, #tpu.memory_space<vmem>>, vector<1x128xf32>
    tpu.vector_store %arg11[%88, %c0_35], %87 {strides = array<i32>} : memref<8x128xf32, #tpu.memory_space<vmem>>, vector<1x128xf32>,
    %c3_i32 = arith.constant 3 : i32
    %90 = arith.index_cast %c3_i32 : i32 to index
    %c0_36 = arith.constant 0 : index
    %91 = vector.load %arg10[%90, %c0_36] : memref<8x512xf32, #tpu.memory_space<vmem>>, vector<1x512xf32>
    %c0_37 = arith.constant 0 : index
    %c0_38 = arith.constant 0 : index
    %92 = vector.load %arg4[%c0_37, %c0_38] : memref<128x512xf32, #tpu.memory_space<vmem>>, vector<128x512xf32>
    %cst_39 = arith.constant dense<0.000000e+00> : vector<1x512xf32>
    %93 = tpu.matmul %87, %92, %cst_39 {dimension_numbers = #tpu.dot_dimension_numbers<[1], [0], [0], [1], [0, 0, 1, 1], [], []>} : vector<1x128xf32>, vector<128x512xf32>, vector<1x512xf32> -> vector<1x512xf32>
    %94 = arith.addf %91, %93 : vector<1x512xf32>
    %95 = arith.mulf %94, %18 : vector<1x512xf32>
    %96 = math.tanh %95 : vector<1x512xf32>
    %cst_40 = arith.constant 1.000000e+00 : f32
    %97 = vector.broadcast %cst_40 : f32 to vector<1x512xf32>
    %98 = arith.addf %96, %97 : vector<1x512xf32>
    %cst_41 = arith.constant 5.000000e-01 : f32
    %99 = vector.broadcast %cst_41 : f32 to vector<1x512xf32>
    %100 = arith.mulf %99, %98 : vector<1x512xf32>
    %101 = arith.select %15, %96, %100 : vector<1x512xi1>, vector<1x512xf32>
    %102 = vector.extract_strided_slice %101 {offsets = [0, 0], sizes = [1, 128], strides = [1, 1]} : vector<1x512xf32> to vector<1x128xf32>
    %103 = vector.extract_strided_slice %101 {offsets = [0, 128], sizes = [1, 128], strides = [1, 1]} : vector<1x512xf32> to vector<1x128xf32>
    %104 = vector.extract_strided_slice %101 {offsets = [0, 256], sizes = [1, 128], strides = [1, 1]} : vector<1x512xf32> to vector<1x128xf32>
    %105 = vector.extract_strided_slice %101 {offsets = [0, 384], sizes = [1, 128], strides = [1, 1]} : vector<1x512xf32> to vector<1x128xf32>
    %106 = arith.mulf %103, %85 : vector<1x128xf32>
    %107 = arith.mulf %102, %104 : vector<1x128xf32>
    %108 = arith.addf %106, %107 : vector<1x128xf32>
    %109 = math.tanh %108 : vector<1x128xf32>
    %110 = arith.mulf %105, %109 : vector<1x128xf32>
    %111 = arith.index_cast %c3_i32 : i32 to index
    %c0_42 = arith.constant 0 : index
    %112 = vector.load %arg11[%111, %c0_42] : memref<8x128xf32, #tpu.memory_space<vmem>>, vector<1x128xf32>
    tpu.vector_store %arg11[%111, %c0_42], %110 {strides = array<i32>} : memref<8x128xf32, #tpu.memory_space<vmem>>, vector<1x128xf32>,
    %c4_i32 = arith.constant 4 : i32
    %113 = arith.index_cast %c4_i32 : i32 to index
    %c0_43 = arith.constant 0 : index
    %114 = vector.load %arg10[%113, %c0_43] : memref<8x512xf32, #tpu.memory_space<vmem>>, vector<1x512xf32>
    %c0_44 = arith.constant 0 : index
    %c0_45 = arith.constant 0 : index
    %115 = vector.load %arg4[%c0_44, %c0_45] : memref<128x512xf32, #tpu.memory_space<vmem>>, vector<128x512xf32>
    %cst_46 = arith.constant dense<0.000000e+00> : vector<1x512xf32>
    %116 = tpu.matmul %110, %115, %cst_46 {dimension_numbers = #tpu.dot_dimension_numbers<[1], [0], [0], [1], [0, 0, 1, 1], [], []>} : vector<1x128xf32>, vector<128x512xf32>, vector<1x512xf32> -> vector<1x512xf32>
    %117 = arith.addf %114, %116 : vector<1x512xf32>
    %118 = arith.mulf %117, %18 : vector<1x512xf32>
    %119 = math.tanh %118 : vector<1x512xf32>
    %cst_47 = arith.constant 1.000000e+00 : f32
    %120 = vector.broadcast %cst_47 : f32 to vector<1x512xf32>
    %121 = arith.addf %119, %120 : vector<1x512xf32>
    %cst_48 = arith.constant 5.000000e-01 : f32
    %122 = vector.broadcast %cst_48 : f32 to vector<1x512xf32>
    %123 = arith.mulf %122, %121 : vector<1x512xf32>
    %124 = arith.select %15, %119, %123 : vector<1x512xi1>, vector<1x512xf32>
    %125 = vector.extract_strided_slice %124 {offsets = [0, 0], sizes = [1, 128], strides = [1, 1]} : vector<1x512xf32> to vector<1x128xf32>
    %126 = vector.extract_strided_slice %124 {offsets = [0, 128], sizes = [1, 128], strides = [1, 1]} : vector<1x512xf32> to vector<1x128xf32>
    %127 = vector.extract_strided_slice %124 {offsets = [0, 256], sizes = [1, 128], strides = [1, 1]} : vector<1x512xf32> to vector<1x128xf32>
    %128 = vector.extract_strided_slice %124 {offsets = [0, 384], sizes = [1, 128], strides = [1, 1]} : vector<1x512xf32> to vector<1x128xf32>
    %129 = arith.mulf %126, %108 : vector<1x128xf32>
    %130 = arith.mulf %125, %127 : vector<1x128xf32>
    %131 = arith.addf %129, %130 : vector<1x128xf32>
    %132 = math.tanh %131 : vector<1x128xf32>
    %133 = arith.mulf %128, %132 : vector<1x128xf32>
    %134 = arith.index_cast %c4_i32 : i32 to index
    %c0_49 = arith.constant 0 : index
    %135 = vector.load %arg11[%134, %c0_49] : memref<8x128xf32, #tpu.memory_space<vmem>>, vector<1x128xf32>
    tpu.vector_store %arg11[%134, %c0_49], %133 {strides = array<i32>} : memref<8x128xf32, #tpu.memory_space<vmem>>, vector<1x128xf32>,
    %c5_i32 = arith.constant 5 : i32
    %136 = arith.index_cast %c5_i32 : i32 to index
    %c0_50 = arith.constant 0 : index
    %137 = vector.load %arg10[%136, %c0_50] : memref<8x512xf32, #tpu.memory_space<vmem>>, vector<1x512xf32>
    %c0_51 = arith.constant 0 : index
    %c0_52 = arith.constant 0 : index
    %138 = vector.load %arg4[%c0_51, %c0_52] : memref<128x512xf32, #tpu.memory_space<vmem>>, vector<128x512xf32>
    %cst_53 = arith.constant dense<0.000000e+00> : vector<1x512xf32>
    %139 = tpu.matmul %133, %138, %cst_53 {dimension_numbers = #tpu.dot_dimension_numbers<[1], [0], [0], [1], [0, 0, 1, 1], [], []>} : vector<1x128xf32>, vector<128x512xf32>, vector<1x512xf32> -> vector<1x512xf32>
    %140 = arith.addf %137, %139 : vector<1x512xf32>
    %141 = arith.mulf %140, %18 : vector<1x512xf32>
    %142 = math.tanh %141 : vector<1x512xf32>
    %cst_54 = arith.constant 1.000000e+00 : f32
    %143 = vector.broadcast %cst_54 : f32 to vector<1x512xf32>
    %144 = arith.addf %142, %143 : vector<1x512xf32>
    %cst_55 = arith.constant 5.000000e-01 : f32
    %145 = vector.broadcast %cst_55 : f32 to vector<1x512xf32>
    %146 = arith.mulf %145, %144 : vector<1x512xf32>
    %147 = arith.select %15, %142, %146 : vector<1x512xi1>, vector<1x512xf32>
    %148 = vector.extract_strided_slice %147 {offsets = [0, 0], sizes = [1, 128], strides = [1, 1]} : vector<1x512xf32> to vector<1x128xf32>
    %149 = vector.extract_strided_slice %147 {offsets = [0, 128], sizes = [1, 128], strides = [1, 1]} : vector<1x512xf32> to vector<1x128xf32>
    %150 = vector.extract_strided_slice %147 {offsets = [0, 256], sizes = [1, 128], strides = [1, 1]} : vector<1x512xf32> to vector<1x128xf32>
    %151 = vector.extract_strided_slice %147 {offsets = [0, 384], sizes = [1, 128], strides = [1, 1]} : vector<1x512xf32> to vector<1x128xf32>
    %152 = arith.mulf %149, %131 : vector<1x128xf32>
    %153 = arith.mulf %148, %150 : vector<1x128xf32>
    %154 = arith.addf %152, %153 : vector<1x128xf32>
    %155 = math.tanh %154 : vector<1x128xf32>
    %156 = arith.mulf %151, %155 : vector<1x128xf32>
    %157 = arith.index_cast %c5_i32 : i32 to index
    %c0_56 = arith.constant 0 : index
    %158 = vector.load %arg11[%157, %c0_56] : memref<8x128xf32, #tpu.memory_space<vmem>>, vector<1x128xf32>
    tpu.vector_store %arg11[%157, %c0_56], %156 {strides = array<i32>} : memref<8x128xf32, #tpu.memory_space<vmem>>, vector<1x128xf32>,
    %c6_i32 = arith.constant 6 : i32
    %159 = arith.index_cast %c6_i32 : i32 to index
    %c0_57 = arith.constant 0 : index
    %160 = vector.load %arg10[%159, %c0_57] : memref<8x512xf32, #tpu.memory_space<vmem>>, vector<1x512xf32>
    %c0_58 = arith.constant 0 : index
    %c0_59 = arith.constant 0 : index
    %161 = vector.load %arg4[%c0_58, %c0_59] : memref<128x512xf32, #tpu.memory_space<vmem>>, vector<128x512xf32>
    %cst_60 = arith.constant dense<0.000000e+00> : vector<1x512xf32>
    %162 = tpu.matmul %156, %161, %cst_60 {dimension_numbers = #tpu.dot_dimension_numbers<[1], [0], [0], [1], [0, 0, 1, 1], [], []>} : vector<1x128xf32>, vector<128x512xf32>, vector<1x512xf32> -> vector<1x512xf32>
    %163 = arith.addf %160, %162 : vector<1x512xf32>
    %164 = arith.mulf %163, %18 : vector<1x512xf32>
    %165 = math.tanh %164 : vector<1x512xf32>
    %cst_61 = arith.constant 1.000000e+00 : f32
    %166 = vector.broadcast %cst_61 : f32 to vector<1x512xf32>
    %167 = arith.addf %165, %166 : vector<1x512xf32>
    %cst_62 = arith.constant 5.000000e-01 : f32
    %168 = vector.broadcast %cst_62 : f32 to vector<1x512xf32>
    %169 = arith.mulf %168, %167 : vector<1x512xf32>
    %170 = arith.select %15, %165, %169 : vector<1x512xi1>, vector<1x512xf32>
    %171 = vector.extract_strided_slice %170 {offsets = [0, 0], sizes = [1, 128], strides = [1, 1]} : vector<1x512xf32> to vector<1x128xf32>
    %172 = vector.extract_strided_slice %170 {offsets = [0, 128], sizes = [1, 128], strides = [1, 1]} : vector<1x512xf32> to vector<1x128xf32>
    %173 = vector.extract_strided_slice %170 {offsets = [0, 256], sizes = [1, 128], strides = [1, 1]} : vector<1x512xf32> to vector<1x128xf32>
    %174 = vector.extract_strided_slice %170 {offsets = [0, 384], sizes = [1, 128], strides = [1, 1]} : vector<1x512xf32> to vector<1x128xf32>
    %175 = arith.mulf %172, %154 : vector<1x128xf32>
    %176 = arith.mulf %171, %173 : vector<1x128xf32>
    %177 = arith.addf %175, %176 : vector<1x128xf32>
    %178 = math.tanh %177 : vector<1x128xf32>
    %179 = arith.mulf %174, %178 : vector<1x128xf32>
    %180 = arith.index_cast %c6_i32 : i32 to index
    %c0_63 = arith.constant 0 : index
    %181 = vector.load %arg11[%180, %c0_63] : memref<8x128xf32, #tpu.memory_space<vmem>>, vector<1x128xf32>
    tpu.vector_store %arg11[%180, %c0_63], %179 {strides = array<i32>} : memref<8x128xf32, #tpu.memory_space<vmem>>, vector<1x128xf32>,
    %c7_i32 = arith.constant 7 : i32
    %182 = arith.index_cast %c7_i32 : i32 to index
    %c0_64 = arith.constant 0 : index
    %183 = vector.load %arg10[%182, %c0_64] : memref<8x512xf32, #tpu.memory_space<vmem>>, vector<1x512xf32>
    %c0_65 = arith.constant 0 : index
    %c0_66 = arith.constant 0 : index
    %184 = vector.load %arg4[%c0_65, %c0_66] : memref<128x512xf32, #tpu.memory_space<vmem>>, vector<128x512xf32>
    %cst_67 = arith.constant dense<0.000000e+00> : vector<1x512xf32>
    %185 = tpu.matmul %179, %184, %cst_67 {dimension_numbers = #tpu.dot_dimension_numbers<[1], [0], [0], [1], [0, 0, 1, 1], [], []>} : vector<1x128xf32>, vector<128x512xf32>, vector<1x512xf32> -> vector<1x512xf32>
    %186 = arith.addf %183, %185 : vector<1x512xf32>
    %187 = arith.mulf %186, %18 : vector<1x512xf32>
    %188 = math.tanh %187 : vector<1x512xf32>
    %cst_68 = arith.constant 1.000000e+00 : f32
    %189 = vector.broadcast %cst_68 : f32 to vector<1x512xf32>
    %190 = arith.addf %188, %189 : vector<1x512xf32>
    %cst_69 = arith.constant 5.000000e-01 : f32
    %191 = vector.broadcast %cst_69 : f32 to vector<1x512xf32>
    %192 = arith.mulf %191, %190 : vector<1x512xf32>
    %193 = arith.select %15, %188, %192 : vector<1x512xi1>, vector<1x512xf32>
    %194 = vector.extract_strided_slice %193 {offsets = [0, 0], sizes = [1, 128], strides = [1, 1]} : vector<1x512xf32> to vector<1x128xf32>
    %195 = vector.extract_strided_slice %193 {offsets = [0, 128], sizes = [1, 128], strides = [1, 1]} : vector<1x512xf32> to vector<1x128xf32>
    %196 = vector.extract_strided_slice %193 {offsets = [0, 256], sizes = [1, 128], strides = [1, 1]} : vector<1x512xf32> to vector<1x128xf32>
    %197 = vector.extract_strided_slice %193 {offsets = [0, 384], sizes = [1, 128], strides = [1, 1]} : vector<1x512xf32> to vector<1x128xf32>
    %198 = arith.mulf %195, %177 : vector<1x128xf32>
    %199 = arith.mulf %194, %196 : vector<1x128xf32>
    %200 = arith.addf %198, %199 : vector<1x128xf32>
    %201 = math.tanh %200 : vector<1x128xf32>
    %202 = arith.mulf %197, %201 : vector<1x128xf32>
    %203 = arith.index_cast %c7_i32 : i32 to index
    %c0_70 = arith.constant 0 : index
    %204 = vector.load %arg11[%203, %c0_70] : memref<8x128xf32, #tpu.memory_space<vmem>>, vector<1x128xf32>
    tpu.vector_store %arg11[%203, %c0_70], %202 {strides = array<i32>} : memref<8x128xf32, #tpu.memory_space<vmem>>, vector<1x128xf32>,
    %c8_i32 = arith.constant 8 : i32
    %c0_71 = arith.constant 0 : index
    %c0_72 = arith.constant 0 : index
    %205 = vector.load %arg8[%c0_71, %c0_72] : memref<1x128xf32, #tpu.memory_space<vmem>>, vector<1x128xf32>
    tpu.vector_store %arg8[%c0_71, %c0_72], %202 {strides = array<i32>} : memref<1x128xf32, #tpu.memory_space<vmem>>, vector<1x128xf32>,
    %c0_73 = arith.constant 0 : index
    %c0_74 = arith.constant 0 : index
    %206 = vector.load %arg9[%c0_73, %c0_74] : memref<1x128xf32, #tpu.memory_space<vmem>>, vector<1x128xf32>
    tpu.vector_store %arg9[%c0_73, %c0_74], %200 {strides = array<i32>} : memref<1x128xf32, #tpu.memory_space<vmem>>, vector<1x128xf32>,
    %c0_75 = arith.constant 0 : index
    %c0_76 = arith.constant 0 : index
    %207 = vector.load %arg11[%c0_75, %c0_76] : memref<8x128xf32, #tpu.memory_space<vmem>>, vector<8x128xf32>
    %c0_77 = arith.constant 0 : index
    %c0_78 = arith.constant 0 : index
    %208 = vector.load %arg5[%c0_77, %c0_78] : memref<128x384xf32, #tpu.memory_space<vmem>>, vector<128x384xf32>
    %cst_79 = arith.constant dense<0.000000e+00> : vector<8x384xf32>
    %209 = tpu.matmul %207, %208, %cst_79 {dimension_numbers = #tpu.dot_dimension_numbers<[1], [0], [0], [1], [0, 0, 1, 1], [], []>} : vector<8x128xf32>, vector<128x384xf32>, vector<8x384xf32> -> vector<8x384xf32>
    %c0_80 = arith.constant 0 : index
    %c0_81 = arith.constant 0 : index
    %210 = vector.load %arg6[%c0_80, %c0_81] : memref<1x384xf32, #tpu.memory_space<vmem>>, vector<1x384xf32>
    %211 = vector.broadcast %210 : vector<1x384xf32> to vector<8x384xf32>
    %212 = arith.addf %209, %211 : vector<8x384xf32>
    %c0_82 = arith.constant 0 : index
    %c0_83 = arith.constant 0 : index
    %213 = vector.load %arg7[%c0_82, %c0_83] : memref<8x384xf32, #tpu.memory_space<vmem>>, vector<8x384xf32>
    tpu.vector_store %arg7[%c0_82, %c0_83], %212 {strides = array<i32>} : memref<8x384xf32, #tpu.memory_space<vmem>>, vector<8x384xf32>,
    return
  }
  func.func @transform_0(%arg0: i32) -> (i32, i32) {
    %c0_i32 = arith.constant 0 : i32
    %c0_i32_0 = arith.constant 0 : i32
    return %arg0, %c0_i32 : i32, i32
  }
  func.func @transform_1(%arg0: i32) -> (i32, i32) {
    %c0_i32 = arith.constant 0 : i32
    %c0_i32_0 = arith.constant 0 : i32
    %c0_i32_1 = arith.constant 0 : i32
    return %c0_i32, %c0_i32_0 : i32, i32
  }
  func.func @transform_2(%arg0: i32) -> (i32, i32) {
    %c0_i32 = arith.constant 0 : i32
    %c0_i32_0 = arith.constant 0 : i32
    %c0_i32_1 = arith.constant 0 : i32
    return %c0_i32, %c0_i32_0 : i32, i32
  }
  func.func @transform_3(%arg0: i32) -> (i32, i32) {
    %c0_i32 = arith.constant 0 : i32
    %c0_i32_0 = arith.constant 0 : i32
    %c0_i32_1 = arith.constant 0 : i32
    return %c0_i32, %c0_i32_0 : i32, i32
  }
  func.func @transform_4(%arg0: i32) -> (i32, i32) {
    %c0_i32 = arith.constant 0 : i32
    %c0_i32_0 = arith.constant 0 : i32
    %c0_i32_1 = arith.constant 0 : i32
    return %c0_i32, %c0_i32_0 : i32, i32
  }
  func.func @transform_5(%arg0: i32) -> (i32, i32) {
    %c0_i32 = arith.constant 0 : i32
    %c0_i32_0 = arith.constant 0 : i32
    %c0_i32_1 = arith.constant 0 : i32
    return %c0_i32, %c0_i32_0 : i32, i32
  }
  func.func @transform_6(%arg0: i32) -> (i32, i32) {
    %c0_i32 = arith.constant 0 : i32
    %c0_i32_0 = arith.constant 0 : i32
    return %arg0, %c0_i32 : i32, i32
  }
}

</mosaic_0001>

<bundles_post_ra>
// kernel: lstm_controller_forward.1
= control target key start
LH: loop header
LB: loop body
LE: loop exit
PB: predicated region body
PF: predicated region fallthrough
CT: control target
= control target key end

     0   :  { %v5349_v3 = vmov 0.0   ;;  %vm3246_vm0 = vmmov 0   ;;  %s5342_s1 = inlined_call_operand.vmem [shape: f32[384,512], index: 1, kind: input, shape index: {}]   ;;  %s5343_s0 = inlined_call_operand.vmem [shape: f32[8,384], index: 0, kind: input, shape index: {}]   ;;  %s5344_s3 = inlined_call_operand.vmem [shape: f32[128,512], index: 3, kind: input, shape index: {}]   ;;  %s5345_s2 = inlined_call_operand.vmem [shape: f32[1,512], index: 2, kind: input, shape index: {}]   ;;  %s5346_s4 = inlined_call_operand.vmem [shape: f32[128,384], index: 4, kind: input, shape index: {}]   ;;  %s5347_s5 = inlined_call_operand.vmem [shape: f32[1,384], index: 5, kind: input, shape index: {}]   ;;  %s5348_s6 = inlined_call_operand.vmem [shape: f32[8,384], index: 6, kind: output, shape index: {}]  }
   0x1   :  { %v93_v0 = vld [vmem:[%s5342_s1 + $0x1e8] sm:$0xff]  ;;  %v92_v2 = vld [vmem:[%s5342_s1 + $0x1e0] sm:$0xff]  ;;  %381 = vmatprep.mubr.f32.mxu1 %v5349_v3  ;;  %27 = vst [vmem:[#allocation2] sm:$0x1] %v5349_v3  ;;  %28 = vst [vmem:[#allocation3] sm:$0x1] %v5349_v3 }
   0x2   :  { %v221_v1 = vld [vmem:[%s5342_s1 + $0x5e8] sm:$0xff]  ;;  %246 = vmatprep.subr.mxu0 %v93_v0  ;;  %v220_v4 = vld [vmem:[%s5342_s1 + $0x5e0] sm:$0xff] }
   0x3   :  { %317 = vmatprep.subr.mxu1 %v221_v1  ;;  %v89_v5 = vld [vmem:[%s5342_s1 + $0x1c8] sm:$0xff]  ;;  %247 = vmatpush1.msra.mxu0 %v92_v2  ;;  %v88_v7 = vld [vmem:[%s5342_s1 + $0x1c0] sm:$0xff]  ;;  %v3483_v2 = vld [vmem:[%s5343_s0 + $0x10] sm:$0xff] }
   0x4   :  { %v217_v6 = vld [vmem:[%s5342_s1 + $0x5c8] sm:$0xff]  ;;  %318 = vmatpush1.msra.mxu1 %v220_v4  ;;  %v216_v8 = vld [vmem:[%s5342_s1 + $0x5c0] sm:$0xff]  ;;  %248 = vmatprep.subr.mxu0 %v89_v5  ;;  %v95_v4 = vld [vmem:[%s5342_s1 + $0x1f8] sm:$0xff] }
   0x5   :  { %v85_v9 = vld [vmem:[%s5342_s1 + $0x1a8] sm:$0xff]  ;;  %319 = vmatprep.subr.mxu1 %v217_v6  ;;  %v84_v11 = vld [vmem:[%s5342_s1 + $0x1a0] sm:$0xff]  ;;  %249 = vmatpush1.msra.mxu0 %v88_v7  ;;  %v94_v6 = vld [vmem:[%s5342_s1 + $0x1f0] sm:$0xff] }
   0x6   :  { %v213_v10 = vld [vmem:[%s5342_s1 + $0x5a8] sm:$0xff]  ;;  %v212_v12 = vld [vmem:[%s5342_s1 + $0x5a0] sm:$0xff]  ;;  %320 = vmatpush1.msra.mxu1 %v216_v8  ;;  %250 = vmatprep.subr.mxu0 %v85_v9  ;;  %v91_v8 = vld [vmem:[%s5342_s1 + $0x1d8] sm:$0xff] }
   0x7   :  { %v81_v13 = vld [vmem:[%s5342_s1 + $0x188] sm:$0xff]  ;;  %321 = vmatprep.subr.mxu1 %v213_v10  ;;  %v80_v15 = vld [vmem:[%s5342_s1 + $0x180] sm:$0xff]  ;;  %251 = vmatpush1.msra.mxu0 %v84_v11  ;;  %v90_v10 = vld [vmem:[%s5342_s1 + $0x1d0] sm:$0xff] }
   0x8   :  { %v209_v14 = vld [vmem:[%s5342_s1 + $0x588] sm:$0xff]  ;;  %v208_v16 = vld [vmem:[%s5342_s1 + $0x580] sm:$0xff]  ;;  %322 = vmatpush1.msra.mxu1 %v212_v12  ;;  %252 = vmatprep.subr.mxu0 %v81_v13  ;;  %v87_v12 = vld [vmem:[%s5342_s1 + $0x1b8] sm:$0xff] }
   0x9   :  { %v77_v17 = vld [vmem:[%s5342_s1 + $0x168] sm:$0xff]  ;;  %323 = vmatprep.subr.mxu1 %v209_v14  ;;  %v76_v19 = vld [vmem:[%s5342_s1 + $0x160] sm:$0xff]  ;;  %253 = vmatpush1.msra.mxu0 %v80_v15  ;;  %v86_v14 = vld [vmem:[%s5342_s1 + $0x1b0] sm:$0xff] }
   0xa   :  { %v205_v18 = vld [vmem:[%s5342_s1 + $0x568] sm:$0xff]  ;;  %v204_v20 = vld [vmem:[%s5342_s1 + $0x560] sm:$0xff]  ;;  %324 = vmatpush1.msra.mxu1 %v208_v16  ;;  %254 = vmatprep.subr.mxu0 %v77_v17  ;;  %v83_v16 = vld [vmem:[%s5342_s1 + $0x198] sm:$0xff] }
   0xb   :  { %v73_v21 = vld [vmem:[%s5342_s1 + $0x148] sm:$0xff]  ;;  %325 = vmatprep.subr.mxu1 %v205_v18  ;;  %v72_v23 = vld [vmem:[%s5342_s1 + $0x140] sm:$0xff]  ;;  %255 = vmatpush1.msra.mxu0 %v76_v19  ;;  %v82_v18 = vld [vmem:[%s5342_s1 + $0x190] sm:$0xff] }
   0xc   :  { %v201_v22 = vld [vmem:[%s5342_s1 + $0x548] sm:$0xff]  ;;  %v200_v24 = vld [vmem:[%s5342_s1 + $0x540] sm:$0xff]  ;;  %326 = vmatpush1.msra.mxu1 %v204_v20  ;;  %256 = vmatprep.subr.mxu0 %v73_v21  ;;  %v79_v20 = vld [vmem:[%s5342_s1 + $0x178] sm:$0xff] }
   0xd   :  { %v69_v25 = vld [vmem:[%s5342_s1 + $0x128] sm:$0xff]  ;;  %327 = vmatprep.subr.mxu1 %v201_v22  ;;  %v68_v27 = vld [vmem:[%s5342_s1 + $0x120] sm:$0xff]  ;;  %257 = vmatpush1.msra.mxu0 %v72_v23  ;;  %v78_v22 = vld [vmem:[%s5342_s1 + $0x170] sm:$0xff] }
   0xe   :  { %v197_v26 = vld [vmem:[%s5342_s1 + $0x528] sm:$0xff]  ;;  %v196_v28 = vld [vmem:[%s5342_s1 + $0x520] sm:$0xff]  ;;  %328 = vmatpush1.msra.mxu1 %v200_v24  ;;  %258 = vmatprep.subr.mxu0 %v69_v25  ;;  %v75_v24 = vld [vmem:[%s5342_s1 + $0x158] sm:$0xff] }
   0xf   :  { %v65_v29 = vld [vmem:[%s5342_s1 + $0x108] sm:$0xff]  ;;  %329 = vmatprep.subr.mxu1 %v197_v26  ;;  %v64_v31 = vld [vmem:[%s5342_s1 + $0x100] sm:$0xff]  ;;  %259 = vmatpush1.msra.mxu0 %v68_v27  ;;  %v74_v26 = vld [vmem:[%s5342_s1 + $0x150] sm:$0xff] }
  0x10   :  { %v193_v30 = vld [vmem:[%s5342_s1 + $0x508] sm:$0xff]  ;;  %v192_v32 = vld [vmem:[%s5342_s1 + $0x500] sm:$0xff]  ;;  %330 = vmatpush1.msra.mxu1 %v196_v28  ;;  %260 = vmatprep.subr.mxu0 %v65_v29  ;;  %v71_v28 = vld [vmem:[%s5342_s1 + $0x138] sm:$0xff] }
  0x11   :  { %v61_v33 = vld [vmem:[%s5342_s1 + $0xe8] sm:$0xff]  ;;  %331 = vmatprep.subr.mxu1 %v193_v30  ;;  %v60_v35 = vld [vmem:[%s5342_s1 + $0xe0] sm:$0xff]  ;;  %261 = vmatpush1.msra.mxu0 %v64_v31  ;;  %v70_v30 = vld [vmem:[%s5342_s1 + $0x130] sm:$0xff] }
  0x12   :  { %v189_v34 = vld [vmem:[%s5342_s1 + $0x4e8] sm:$0xff]  ;;  %v188_v36 = vld [vmem:[%s5342_s1 + $0x4e0] sm:$0xff]  ;;  %332 = vmatpush1.msra.mxu1 %v192_v32  ;;  %262 = vmatprep.subr.mxu0 %v61_v33  ;;  %v67_v32 = vld [vmem:[%s5342_s1 + $0x118] sm:$0xff] }
  0x13   :  { %v57_v37 = vld [vmem:[%s5342_s1 + $0xc8] sm:$0xff]  ;;  %333 = vmatprep.subr.mxu1 %v189_v34  ;;  %v56_v39 = vld [vmem:[%s5342_s1 + $0xc0] sm:$0xff]  ;;  %263 = vmatpush1.msra.mxu0 %v60_v35  ;;  %v66_v34 = vld [vmem:[%s5342_s1 + $0x110] sm:$0xff] }
  0x14   :  { %v185_v38 = vld [vmem:[%s5342_s1 + $0x4c8] sm:$0xff]  ;;  %v184_v40 = vld [vmem:[%s5342_s1 + $0x4c0] sm:$0xff]  ;;  %334 = vmatpush1.msra.mxu1 %v188_v36  ;;  %264 = vmatprep.subr.mxu0 %v57_v37  ;;  %v63_v36 = vld [vmem:[%s5342_s1 + $0xf8] sm:$0xff] }
  0x15   :  { %v53_v41 = vld [vmem:[%s5342_s1 + $0xa8] sm:$0xff]  ;;  %335 = vmatprep.subr.mxu1 %v185_v38  ;;  %v52_v43 = vld [vmem:[%s5342_s1 + $0xa0] sm:$0xff]  ;;  %265 = vmatpush1.msra.mxu0 %v56_v39  ;;  %v62_v38 = vld [vmem:[%s5342_s1 + $0xf0] sm:$0xff] }
  0x16   :  { %v181_v42 = vld [vmem:[%s5342_s1 + $0x4a8] sm:$0xff]  ;;  %v180_v44 = vld [vmem:[%s5342_s1 + $0x4a0] sm:$0xff]  ;;  %336 = vmatpush1.msra.mxu1 %v184_v40  ;;  %266 = vmatprep.subr.mxu0 %v53_v41  ;;  %v59_v40 = vld [vmem:[%s5342_s1 + $0xd8] sm:$0xff] }
  0x17   :  { %v49_v45 = vld [vmem:[%s5342_s1 + $0x88] sm:$0xff]  ;;  %337 = vmatprep.subr.mxu1 %v181_v42  ;;  %v48_v47 = vld [vmem:[%s5342_s1 + $0x80] sm:$0xff]  ;;  %267 = vmatpush1.msra.mxu0 %v52_v43  ;;  %v58_v42 = vld [vmem:[%s5342_s1 + $0xd0] sm:$0xff] }
  0x18   :  { %v177_v46 = vld [vmem:[%s5342_s1 + $0x488] sm:$0xff]  ;;  %v176_v48 = vld [vmem:[%s5342_s1 + $0x480] sm:$0xff]  ;;  %338 = vmatpush1.msra.mxu1 %v180_v44  ;;  %268 = vmatprep.subr.mxu0 %v49_v45  ;;  %v55_v44 = vld [vmem:[%s5342_s1 + $0xb8] sm:$0xff] }
  0x19   :  { %v45_v49 = vld [vmem:[%s5342_s1 + $0x68] sm:$0xff]  ;;  %339 = vmatprep.subr.mxu1 %v177_v46  ;;  %v44_v51 = vld [vmem:[%s5342_s1 + $0x60] sm:$0xff]  ;;  %269 = vmatpush1.msra.mxu0 %v48_v47  ;;  %v54_v46 = vld [vmem:[%s5342_s1 + $0xb0] sm:$0xff] }
  0x1a   :  { %v173_v50 = vld [vmem:[%s5342_s1 + $0x468] sm:$0xff]  ;;  %v172_v52 = vld [vmem:[%s5342_s1 + $0x460] sm:$0xff]  ;;  %340 = vmatpush1.msra.mxu1 %v176_v48  ;;  %270 = vmatprep.subr.mxu0 %v45_v49  ;;  %v51_v48 = vld [vmem:[%s5342_s1 + $0x98] sm:$0xff] }
  0x1b   :  { %v41_v53 = vld [vmem:[%s5342_s1 + $0x48] sm:$0xff]  ;;  %341 = vmatprep.subr.mxu1 %v173_v50  ;;  %v40_v55 = vld [vmem:[%s5342_s1 + $0x40] sm:$0xff]  ;;  %271 = vmatpush1.msra.mxu0 %v44_v51  ;;  %v50_v50 = vld [vmem:[%s5342_s1 + $0x90] sm:$0xff] }
  0x1c   :  { %v169_v54 = vld [vmem:[%s5342_s1 + $0x448] sm:$0xff]  ;;  %v168_v56 = vld [vmem:[%s5342_s1 + $0x440] sm:$0xff]  ;;  %342 = vmatpush1.msra.mxu1 %v172_v52  ;;  %272 = vmatprep.subr.mxu0 %v41_v53  ;;  %v47_v52 = vld [vmem:[%s5342_s1 + $0x78] sm:$0xff] }
  0x1d   :  { %v37_v57 = vld [vmem:[%s5342_s1 + $0x28] sm:$0xff]  ;;  %343 = vmatprep.subr.mxu1 %v169_v54  ;;  %v36_v59 = vld [vmem:[%s5342_s1 + $0x20] sm:$0xff]  ;;  %273 = vmatpush1.msra.mxu0 %v40_v55  ;;  %v46_v54 = vld [vmem:[%s5342_s1 + $0x70] sm:$0xff] }
  0x1e   :  { %v165_v58 = vld [vmem:[%s5342_s1 + $0x428] sm:$0xff]  ;;  %v164_v60 = vld [vmem:[%s5342_s1 + $0x420] sm:$0xff]  ;;  %344 = vmatpush1.msra.mxu1 %v168_v56  ;;  %274 = vmatprep.subr.mxu0 %v37_v57  ;;  %v43_v56 = vld [vmem:[%s5342_s1 + $0x58] sm:$0xff] }
  0x1f   :  { %v33_v61 = vld [vmem:[%s5342_s1 + $0x8] sm:$0xff]  ;;  %345 = vmatprep.subr.mxu1 %v165_v58  ;;  %v32_v63 = vld [vmem:[%s5342_s1] sm:$0xff]  ;;  %275 = vmatpush1.msra.mxu0 %v36_v59  ;;  %v42_v58 = vld [vmem:[%s5342_s1 + $0x50] sm:$0xff] }
  0x20   :  { %v161_v62 = vld [vmem:[%s5342_s1 + $0x408] sm:$0xff]  ;;  %v160_v0 = vld [vmem:[%s5342_s1 + $0x400] sm:$0xff]  ;;  %346 = vmatpush1.msra.mxu1 %v164_v60  ;;  %276 = vmatprep.subr.mxu0 %v33_v61  ;;  %v39_v60 = vld [vmem:[%s5342_s1 + $0x38] sm:$0xff] }
  0x21   :  { %v157_v1 = vld [vmem:[%s5342_s1 + $0x3e8] sm:$0xff]  ;;  %347 = vmatprep.subr.mxu1 %v161_v62  ;;  %v156_v5 = vld [vmem:[%s5342_s1 + $0x3e0] sm:$0xff]  ;;  %277 = vmatpush1.msra.mxu0 %v32_v63  ;;  %v38_v62 = vld [vmem:[%s5342_s1 + $0x30] sm:$0xff] }
  0x22   :  { %348 = vmatpush1.msra.mxu1 %v160_v0  ;;  %v153_v7 = vld [vmem:[%s5342_s1 + $0x3c8] sm:$0xff]  ;;  %278 = vmatprep.subr.mxu0 %v157_v1  ;;  %v152_v9 = vld [vmem:[%s5342_s1 + $0x3c0] sm:$0xff]  ;;  %v35_v0 = vld [vmem:[%s5342_s1 + $0x18] sm:$0xff] }
  0x23   :  { %382 = vmatmul.mubr.f32.vlgmr.msra.gmra.mxu1 %v3483_v2  ;;  %388 = vmatprep.subr.mxu1 %v95_v4  ;;  %v149_v11 = vld [vmem:[%s5342_s1 + $0x3a8] sm:$0xff]  ;;  %v148_v13 = vld [vmem:[%s5342_s1 + $0x3a0] sm:$0xff] }
  0x24   :  { %279 = vmatpush2.msra.mxu0 %v156_v5  ;;  %389 = vmatpush1.msra.mxu1 %v94_v6  ;;  %v145_v15 = vld [vmem:[%s5342_s1 + $0x388] sm:$0xff]  ;;  %v144_v17 = vld [vmem:[%s5342_s1 + $0x380] sm:$0xff]  ;;  %v34_v5 = vld [vmem:[%s5342_s1 + $0x10] sm:$0xff] }
  0x25   :  { %280 = vmatprep.subr.mxu0 %v153_v7  ;;  %390 = vmatprep.subr.mxu1 %v91_v8  ;;  %v141_v19 = vld [vmem:[%s5342_s1 + $0x368] sm:$0xff]  ;;  %v140_v21 = vld [vmem:[%s5342_s1 + $0x360] sm:$0xff]  ;;  %v159_v7 = vld [vmem:[%s5342_s1 + $0x3f8] sm:$0xff] }
  0x26   :  { %281 = vmatpush2.msra.mxu0 %v152_v9  ;;  %391 = vmatpush1.msra.mxu1 %v90_v10  ;;  %v137_v23 = vld [vmem:[%s5342_s1 + $0x348] sm:$0xff]  ;;  %v136_v25 = vld [vmem:[%s5342_s1 + $0x340] sm:$0xff]  ;;  %v223_v8 = vld [vmem:[%s5342_s1 + $0x5f8] sm:$0xff] }
  0x27   :  { %282 = vmatprep.subr.mxu0 %v149_v11  ;;  %392 = vmatprep.subr.mxu1 %v87_v12  ;;  %v133_v27 = vld [vmem:[%s5342_s1 + $0x328] sm:$0xff]  ;;  %v132_v29 = vld [vmem:[%s5342_s1 + $0x320] sm:$0xff]  ;;  %v158_v9 = vld [vmem:[%s5342_s1 + $0x3f0] sm:$0xff] }
  0x28   :  { %283 = vmatpush2.msra.mxu0 %v148_v13  ;;  %393 = vmatpush1.msra.mxu1 %v86_v14  ;;  %v129_v31 = vld [vmem:[%s5342_s1 + $0x308] sm:$0xff]  ;;  %v128_v33 = vld [vmem:[%s5342_s1 + $0x300] sm:$0xff]  ;;  %v222_v10 = vld [vmem:[%s5342_s1 + $0x5f0] sm:$0xff] }
  0x29   :  { %284 = vmatprep.subr.mxu0 %v145_v15  ;;  %394 = vmatprep.subr.mxu1 %v83_v16  ;;  %v125_v35 = vld [vmem:[%s5342_s1 + $0x2e8] sm:$0xff]  ;;  %v124_v37 = vld [vmem:[%s5342_s1 + $0x2e0] sm:$0xff]  ;;  %v155_v11 = vld [vmem:[%s5342_s1 + $0x3d8] sm:$0xff] }
  0x2a   :  { %285 = vmatpush2.msra.mxu0 %v144_v17  ;;  %395 = vmatpush1.msra.mxu1 %v82_v18  ;;  %v121_v39 = vld [vmem:[%s5342_s1 + $0x2c8] sm:$0xff]  ;;  %v120_v41 = vld [vmem:[%s5342_s1 + $0x2c0] sm:$0xff]  ;;  %v219_v12 = vld [vmem:[%s5342_s1 + $0x5d8] sm:$0xff] }
  0x2b   :  { %286 = vmatprep.subr.mxu0 %v141_v19  ;;  %396 = vmatprep.subr.mxu1 %v79_v20  ;;  %v117_v43 = vld [vmem:[%s5342_s1 + $0x2a8] sm:$0xff]  ;;  %v116_v45 = vld [vmem:[%s5342_s1 + $0x2a0] sm:$0xff]  ;;  %v154_v13 = vld [vmem:[%s5342_s1 + $0x3d0] sm:$0xff] }
  0x2c   :  { %287 = vmatpush2.msra.mxu0 %v140_v21  ;;  %397 = vmatpush1.msra.mxu1 %v78_v22  ;;  %v113_v47 = vld [vmem:[%s5342_s1 + $0x288] sm:$0xff]  ;;  %v112_v49 = vld [vmem:[%s5342_s1 + $0x280] sm:$0xff]  ;;  %v218_v14 = vld [vmem:[%s5342_s1 + $0x5d0] sm:$0xff] }
  0x2d   :  { %288 = vmatprep.subr.mxu0 %v137_v23  ;;  %398 = vmatprep.subr.mxu1 %v75_v24  ;;  %v109_v51 = vld [vmem:[%s5342_s1 + $0x268] sm:$0xff]  ;;  %v108_v53 = vld [vmem:[%s5342_s1 + $0x260] sm:$0xff]  ;;  %v151_v15 = vld [vmem:[%s5342_s1 + $0x3b8] sm:$0xff] }
  0x2e   :  { %289 = vmatpush2.msra.mxu0 %v136_v25  ;;  %399 = vmatpush1.msra.mxu1 %v74_v26  ;;  %v105_v55 = vld [vmem:[%s5342_s1 + $0x248] sm:$0xff]  ;;  %v104_v57 = vld [vmem:[%s5342_s1 + $0x240] sm:$0xff]  ;;  %v215_v16 = vld [vmem:[%s5342_s1 + $0x5b8] sm:$0xff] }
  0x2f   :  { %290 = vmatprep.subr.mxu0 %v133_v27  ;;  %400 = vmatprep.subr.mxu1 %v71_v28  ;;  %v101_v59 = vld [vmem:[%s5342_s1 + $0x228] sm:$0xff]  ;;  %v100_v61 = vld [vmem:[%s5342_s1 + $0x220] sm:$0xff]  ;;  %v150_v17 = vld [vmem:[%s5342_s1 + $0x3b0] sm:$0xff] }
  0x30   :  { %291 = vmatpush2.msra.mxu0 %v132_v29  ;;  %401 = vmatpush1.msra.mxu1 %v70_v30  ;;  %v97_v63 = vld [vmem:[%s5342_s1 + $0x208] sm:$0xff]  ;;  %v96_v1 = vld [vmem:[%s5342_s1 + $0x200] sm:$0xff]  ;;  %v214_v18 = vld [vmem:[%s5342_s1 + $0x5b0] sm:$0xff] }
  0x31   :  { %292 = vmatprep.subr.mxu0 %v129_v31  ;;  %402 = vmatprep.subr.mxu1 %v67_v32  ;;  %v3675_v4 = vld [vmem:[%s5343_s0 + $0x8] sm:$0xff]  ;;  %v3683_v6 = vld [vmem:[%s5343_s0] sm:$0xff]  ;;  %v147_v19 = vld [vmem:[%s5342_s1 + $0x398] sm:$0xff] }
  0x32   :  { %293 = vmatpush2.msra.mxu0 %v128_v33  ;;  %403 = vmatpush1.msra.mxu1 %v66_v34  ;;  %v211_v20 = vld [vmem:[%s5342_s1 + $0x598] sm:$0xff]  ;;  %v146_v21 = vld [vmem:[%s5342_s1 + $0x390] sm:$0xff] }
  0x33   :  { %294 = vmatprep.subr.mxu0 %v125_v35  ;;  %404 = vmatprep.subr.mxu1 %v63_v36  ;;  %v210_v22 = vld [vmem:[%s5342_s1 + $0x590] sm:$0xff]  ;;  %v143_v23 = vld [vmem:[%s5342_s1 + $0x378] sm:$0xff] }
  0x34   :  { %295 = vmatpush2.msra.mxu0 %v124_v37  ;;  %405 = vmatpush1.msra.mxu1 %v62_v38  ;;  %v207_v24 = vld [vmem:[%s5342_s1 + $0x578] sm:$0xff]  ;;  %v142_v25 = vld [vmem:[%s5342_s1 + $0x370] sm:$0xff] }
  0x35   :  { %296 = vmatprep.subr.mxu0 %v121_v39  ;;  %406 = vmatprep.subr.mxu1 %v59_v40  ;;  %v206_v26 = vld [vmem:[%s5342_s1 + $0x570] sm:$0xff]  ;;  %v139_v27 = vld [vmem:[%s5342_s1 + $0x358] sm:$0xff] }
  0x36   :  { %297 = vmatpush2.msra.mxu0 %v120_v41  ;;  %407 = vmatpush1.msra.mxu1 %v58_v42  ;;  %v203_v28 = vld [vmem:[%s5342_s1 + $0x558] sm:$0xff]  ;;  %v138_v29 = vld [vmem:[%s5342_s1 + $0x350] sm:$0xff] }
  0x37   :  { %298 = vmatprep.subr.mxu0 %v117_v43  ;;  %408 = vmatprep.subr.mxu1 %v55_v44  ;;  %v202_v30 = vld [vmem:[%s5342_s1 + $0x550] sm:$0xff]  ;;  %v135_v31 = vld [vmem:[%s5342_s1 + $0x338] sm:$0xff] }
  0x38   :  { %299 = vmatpush2.msra.mxu0 %v116_v45  ;;  %409 = vmatpush1.msra.mxu1 %v54_v46  ;;  %v199_v32 = vld [vmem:[%s5342_s1 + $0x538] sm:$0xff]  ;;  %v134_v33 = vld [vmem:[%s5342_s1 + $0x330] sm:$0xff] }
  0x39   :  { %300 = vmatprep.subr.mxu0 %v113_v47  ;;  %410 = vmatprep.subr.mxu1 %v51_v48  ;;  %v198_v34 = vld [vmem:[%s5342_s1 + $0x530] sm:$0xff]  ;;  %v131_v35 = vld [vmem:[%s5342_s1 + $0x318] sm:$0xff] }
  0x3a   :  { %301 = vmatpush2.msra.mxu0 %v112_v49  ;;  %411 = vmatpush1.msra.mxu1 %v50_v50  ;;  %v195_v36 = vld [vmem:[%s5342_s1 + $0x518] sm:$0xff]  ;;  %v130_v37 = vld [vmem:[%s5342_s1 + $0x310] sm:$0xff] }
  0x3b   :  { %302 = vmatprep.subr.mxu0 %v109_v51  ;;  %412 = vmatprep.subr.mxu1 %v47_v52  ;;  %v194_v38 = vld [vmem:[%s5342_s1 + $0x510] sm:$0xff]  ;;  %v127_v39 = vld [vmem:[%s5342_s1 + $0x2f8] sm:$0xff] }
  0x3c   :  { %303 = vmatpush2.msra.mxu0 %v108_v53  ;;  %413 = vmatpush1.msra.mxu1 %v46_v54  ;;  %v191_v40 = vld [vmem:[%s5342_s1 + $0x4f8] sm:$0xff]  ;;  %v126_v41 = vld [vmem:[%s5342_s1 + $0x2f0] sm:$0xff] }
  0x3d   :  { %304 = vmatprep.subr.mxu0 %v105_v55  ;;  %414 = vmatprep.subr.mxu1 %v43_v56  ;;  %v190_v42 = vld [vmem:[%s5342_s1 + $0x4f0] sm:$0xff]  ;;  %v123_v43 = vld [vmem:[%s5342_s1 + $0x2d8] sm:$0xff] }
  0x3e   :  { %305 = vmatpush2.msra.mxu0 %v104_v57  ;;  %415 = vmatpush1.msra.mxu1 %v42_v58  ;;  %v187_v44 = vld [vmem:[%s5342_s1 + $0x4d8] sm:$0xff]  ;;  %v122_v45 = vld [vmem:[%s5342_s1 + $0x2d0] sm:$0xff] }
  0x3f   :  { %306 = vmatprep.subr.mxu0 %v101_v59  ;;  %416 = vmatprep.subr.mxu1 %v39_v60  ;;  %v186_v46 = vld [vmem:[%s5342_s1 + $0x4d0] sm:$0xff]  ;;  %v119_v47 = vld [vmem:[%s5342_s1 + $0x2b8] sm:$0xff] }
  0x40   :  { %307 = vmatpush2.msra.mxu0 %v100_v61  ;;  %417 = vmatpush1.msra.mxu1 %v38_v62  ;;  %v183_v48 = vld [vmem:[%s5342_s1 + $0x4b8] sm:$0xff]  ;;  %v118_v49 = vld [vmem:[%s5342_s1 + $0x2b0] sm:$0xff] }
  0x41   :  { %308 = vmatprep.subr.mxu0 %v97_v63  ;;  %418 = vmatprep.subr.mxu1 %v35_v0  ;;  %v182_v50 = vld [vmem:[%s5342_s1 + $0x4b0] sm:$0xff]  ;;  %v115_v51 = vld [vmem:[%s5342_s1 + $0x298] sm:$0xff] }
  0x42   :  { %309 = vmatpush2.msra.mxu0 %v96_v1  ;;  %310 = vmatprep.mubr.f32.mxu0 %v3675_v4  ;;  %v179_v52 = vld [vmem:[%s5342_s1 + $0x498] sm:$0xff]  ;;  %v114_v53 = vld [vmem:[%s5342_s1 + $0x290] sm:$0xff] }
  0x43   :  { %419 = vmatpush1.msra.mxu1 %v34_v5  ;;  %311 = vmatmul.mubr.f32.vlgmr.msra.gmra.mxu0 %v3683_v6  ;;  %v178_v54 = vld [vmem:[%s5342_s1 + $0x490] sm:$0xff]  ;;  %v111_v55 = vld [vmem:[%s5342_s1 + $0x278] sm:$0xff] }
  0x44   :  { %420 = vmatprep.subr.mxu1 %v159_v7  ;;  %459 = vmatprep.subr.mxu0 %v223_v8  ;;  %v175_v56 = vld [vmem:[%s5342_s1 + $0x478] sm:$0xff]  ;;  %v110_v57 = vld [vmem:[%s5342_s1 + $0x270] sm:$0xff] }
  0x45   :  { %421 = vmatpush2.msra.mxu1 %v158_v9  ;;  %460 = vmatpush1.msra.mxu0 %v222_v10  ;;  %v174_v58 = vld [vmem:[%s5342_s1 + $0x470] sm:$0xff]  ;;  %v107_v59 = vld [vmem:[%s5342_s1 + $0x258] sm:$0xff] }
  0x46   :  { %422 = vmatprep.subr.mxu1 %v155_v11  ;;  %461 = vmatprep.subr.mxu0 %v219_v12  ;;  %v171_v60 = vld [vmem:[%s5342_s1 + $0x458] sm:$0xff]  ;;  %v106_v61 = vld [vmem:[%s5342_s1 + $0x250] sm:$0xff]  ;;  %v3882_v11 = vld [vmem:[%s5344_s3 + $0x1e8] sm:$0xff] }
  0x47   :  { %423 = vmatpush2.msra.mxu1 %v154_v13  ;;  %462 = vmatpush1.msra.mxu0 %v218_v14  ;;  %v170_v62 = vld [vmem:[%s5342_s1 + $0x450] sm:$0xff]  ;;  %v103_v63 = vld [vmem:[%s5342_s1 + $0x238] sm:$0xff]  ;;  %5452 = vst [vmem:[#allocation6_spill] sm:$0xff] %v3882_v11  ;;  %v3893_v13 = vld [vmem:[%s5344_s3 + $0x1e0] sm:$0xff] }
  0x48   :  { %424 = vmatprep.subr.mxu1 %v151_v15  ;;  %463 = vmatprep.subr.mxu0 %v215_v16  ;;  %v167_v0 = vld [vmem:[%s5342_s1 + $0x438] sm:$0xff]  ;;  %v102_v1 = vld [vmem:[%s5342_s1 + $0x230] sm:$0xff]  ;;  %v3929_v16 = vld [vmem:[%s5344_s3 + $0x1a8] sm:$0xff] }
  0x49   :  { %425 = vmatpush2.msra.mxu1 %v150_v17  ;;  %464 = vmatpush1.msra.mxu0 %v214_v18  ;;  %v166_v5 = vld [vmem:[%s5342_s1 + $0x430] sm:$0xff]  ;;  %v99_v7 = vld [vmem:[%s5342_s1 + $0x218] sm:$0xff]  ;;  %v3941_v18 = vld [vmem:[%s5344_s3 + $0x1a0] sm:$0xff] }
  0x4a   :  { %426 = vmatprep.subr.mxu1 %v147_v19  ;;  %465 = vmatprep.subr.mxu0 %v211_v20  ;;  %v163_v8 = vld [vmem:[%s5342_s1 + $0x418] sm:$0xff]  ;;  %v98_v9 = vld [vmem:[%s5342_s1 + $0x210] sm:$0xff]  ;;  %v3953_v20 = vld [vmem:[%s5344_s3 + $0x188] sm:$0xff] }
  0x4b   :  { %427 = vmatpush2.msra.mxu1 %v146_v21  ;;  %466 = vmatpush1.msra.mxu0 %v210_v22  ;;  %v162_v10 = vld [vmem:[%s5342_s1 + $0x410] sm:$0xff]  ;;  %v3888_v12 = vld [vmem:[%s5344_s3 + $0x1f8] sm:$0xff]  ;;  %v3965_v22 = vld [vmem:[%s5344_s3 + $0x180] sm:$0xff] }
  0x4c   :  { %428 = vmatprep.subr.mxu1 %v143_v23  ;;  %467 = vmatprep.subr.mxu0 %v207_v24  ;;  %5453 = vst [vmem:[#allocation7_spill] sm:$0xff] %v3888_v12  ;;  %v3900_v14 = vld [vmem:[%s5344_s3 + $0x1f0] sm:$0xff]  ;;  %v3912_v15 = vld [vmem:[%s5344_s3 + $0x1d8] sm:$0xff]  ;;  %v3977_v24 = vld [vmem:[%s5344_s3 + $0x168] sm:$0xff] }
  0x4d   :  { %429 = vmatpush2.msra.mxu1 %v142_v25  ;;  %468 = vmatpush1.msra.mxu0 %v206_v26  ;;  %v3936_v17 = vld [vmem:[%s5344_s3 + $0x1b8] sm:$0xff]  ;;  %v3948_v19 = vld [vmem:[%s5344_s3 + $0x1b0] sm:$0xff]  ;;  %v3989_v26 = vld [vmem:[%s5344_s3 + $0x160] sm:$0xff] }
  0x4e   :  { %430 = vmatprep.subr.mxu1 %v139_v27  ;;  %469 = vmatprep.subr.mxu0 %v203_v28  ;;  %v3960_v21 = vld [vmem:[%s5344_s3 + $0x198] sm:$0xff]  ;;  %v3972_v23 = vld [vmem:[%s5344_s3 + $0x190] sm:$0xff]  ;;  %v4001_v28 = vld [vmem:[%s5344_s3 + $0x148] sm:$0xff] }
  0x4f   :  { %431 = vmatpush2.msra.mxu1 %v138_v29  ;;  %470 = vmatpush1.msra.mxu0 %v202_v30  ;;  %v3984_v25 = vld [vmem:[%s5344_s3 + $0x178] sm:$0xff]  ;;  %v3996_v27 = vld [vmem:[%s5344_s3 + $0x170] sm:$0xff]  ;;  %v4013_v30 = vld [vmem:[%s5344_s3 + $0x140] sm:$0xff] }
  0x50   :  { %432 = vmatprep.subr.mxu1 %v135_v31  ;;  %471 = vmatprep.subr.mxu0 %v199_v32  ;;  %v4008_v29 = vld [vmem:[%s5344_s3 + $0x158] sm:$0xff]  ;;  %v4020_v31 = vld [vmem:[%s5344_s3 + $0x150] sm:$0xff]  ;;  %v4025_v32 = vld [vmem:[%s5344_s3 + $0x128] sm:$0xff] }
  0x51   :  { %433 = vmatpush2.msra.mxu1 %v134_v33  ;;  %472 = vmatpush1.msra.mxu0 %v198_v34  ;;  %v4032_v33 = vld [vmem:[%s5344_s3 + $0x138] sm:$0xff]  ;;  %v4037_v34 = vld [vmem:[%s5344_s3 + $0x120] sm:$0xff] }
  0x52   :  { %434 = vmatprep.subr.mxu1 %v131_v35  ;;  %473 = vmatprep.subr.mxu0 %v195_v36  ;;  %v4044_v35 = vld [vmem:[%s5344_s3 + $0x130] sm:$0xff]  ;;  %v4049_v36 = vld [vmem:[%s5344_s3 + $0x108] sm:$0xff] }
  0x53   :  { %435 = vmatpush2.msra.mxu1 %v130_v37  ;;  %474 = vmatpush1.msra.mxu0 %v194_v38  ;;  %v4056_v37 = vld [vmem:[%s5344_s3 + $0x118] sm:$0xff]  ;;  %v4061_v38 = vld [vmem:[%s5344_s3 + $0x100] sm:$0xff] }
  0x54   :  { %436 = vmatprep.subr.mxu1 %v127_v39  ;;  %475 = vmatprep.subr.mxu0 %v191_v40  ;;  %v4068_v39 = vld [vmem:[%s5344_s3 + $0x110] sm:$0xff]  ;;  %v4073_v40 = vld [vmem:[%s5344_s3 + $0xe8] sm:$0xff] }
  0x55   :  { %437 = vmatpush2.msra.mxu1 %v126_v41  ;;  %476 = vmatpush1.msra.mxu0 %v190_v42  ;;  %v4080_v41 = vld [vmem:[%s5344_s3 + $0xf8] sm:$0xff]  ;;  %v4085_v42 = vld [vmem:[%s5344_s3 + $0xe0] sm:$0xff] }
  0x56   :  { %438 = vmatprep.subr.mxu1 %v123_v43  ;;  %477 = vmatprep.subr.mxu0 %v187_v44  ;;  %v4092_v43 = vld [vmem:[%s5344_s3 + $0xf0] sm:$0xff]  ;;  %v4097_v44 = vld [vmem:[%s5344_s3 + $0xc8] sm:$0xff] }
  0x57   :  { %439 = vmatpush2.msra.mxu1 %v122_v45  ;;  %478 = vmatpush1.msra.mxu0 %v186_v46  ;;  %v4104_v45 = vld [vmem:[%s5344_s3 + $0xd8] sm:$0xff]  ;;  %v4109_v46 = vld [vmem:[%s5344_s3 + $0xc0] sm:$0xff] }
  0x58   :  { %440 = vmatprep.subr.mxu1 %v119_v47  ;;  %479 = vmatprep.subr.mxu0 %v183_v48  ;;  %v4116_v47 = vld [vmem:[%s5344_s3 + $0xd0] sm:$0xff]  ;;  %v4121_v48 = vld [vmem:[%s5344_s3 + $0xa8] sm:$0xff] }
  0x59   :  { %441 = vmatpush2.msra.mxu1 %v118_v49  ;;  %480 = vmatpush1.msra.mxu0 %v182_v50  ;;  %v4128_v49 = vld [vmem:[%s5344_s3 + $0xb8] sm:$0xff]  ;;  %v4133_v50 = vld [vmem:[%s5344_s3 + $0xa0] sm:$0xff] }
  0x5a   :  { %442 = vmatprep.subr.mxu1 %v115_v51  ;;  %481 = vmatprep.subr.mxu0 %v179_v52  ;;  %5454 = vst [vmem:[#allocation8_spill] sm:$0xff] %v4128_v49  ;;  %5455 = vst [vmem:[#allocation9_spill] sm:$0xff] %v4133_v50  ;;  %v4140_v51 = vld [vmem:[%s5344_s3 + $0xb0] sm:$0xff]  ;;  %v4145_v52 = vld [vmem:[%s5344_s3 + $0x88] sm:$0xff] }
  0x5b   :  { %443 = vmatpush2.msra.mxu1 %v114_v53  ;;  %482 = vmatpush1.msra.mxu0 %v178_v54  ;;  %5456 = vst [vmem:[#allocation10_spill] sm:$0xff] %v4140_v51  ;;  %5457 = vst [vmem:[#allocation11_spill] sm:$0xff] %v4145_v52  ;;  %v4152_v53 = vld [vmem:[%s5344_s3 + $0x98] sm:$0xff]  ;;  %v4157_v54 = vld [vmem:[%s5344_s3 + $0x80] sm:$0xff] }
  0x5c   :  { %444 = vmatprep.subr.mxu1 %v111_v55  ;;  %483 = vmatprep.subr.mxu0 %v175_v56  ;;  %5458 = vst [vmem:[#allocation12_spill] sm:$0xff] %v4152_v53  ;;  %5459 = vst [vmem:[#allocation13_spill] sm:$0xff] %v4157_v54  ;;  %v4164_v55 = vld [vmem:[%s5344_s3 + $0x90] sm:$0xff]  ;;  %v4169_v56 = vld [vmem:[%s5344_s3 + $0x68] sm:$0xff] }
  0x5d   :  { %445 = vmatpush2.msra.mxu1 %v110_v57  ;;  %484 = vmatpush1.msra.mxu0 %v174_v58  ;;  %5460 = vst [vmem:[#allocation14_spill] sm:$0xff] %v4164_v55  ;;  %5461 = vst [vmem:[#allocation15_spill] sm:$0xff] %v4169_v56  ;;  %v4176_v57 = vld [vmem:[%s5344_s3 + $0x78] sm:$0xff]  ;;  %v4181_v58 = vld [vmem:[%s5344_s3 + $0x60] sm:$0xff] }
  0x5e   :  { %446 = vmatprep.subr.mxu1 %v107_v59  ;;  %485 = vmatprep.subr.mxu0 %v171_v60  ;;  %5462 = vst [vmem:[#allocation16_spill] sm:$0xff] %v4176_v57  ;;  %5463 = vst [vmem:[#allocation17_spill] sm:$0xff] %v4181_v58  ;;  %v4188_v59 = vld [vmem:[%s5344_s3 + $0x70] sm:$0xff]  ;;  %v4193_v60 = vld [vmem:[%s5344_s3 + $0x48] sm:$0xff] }
  0x5f   :  { %447 = vmatpush2.msra.mxu1 %v106_v61  ;;  %486 = vmatpush1.msra.mxu0 %v170_v62  ;;  %5464 = vst [vmem:[#allocation18_spill] sm:$0xff] %v4188_v59  ;;  %5465 = vst [vmem:[#allocation19_spill] sm:$0xff] %v4193_v60  ;;  %v4200_v61 = vld [vmem:[%s5344_s3 + $0x58] sm:$0xff]  ;;  %v4205_v62 = vld [vmem:[%s5344_s3 + $0x40] sm:$0xff] }
  0x60   :  { %448 = vmatprep.subr.mxu1 %v103_v63  ;;  %487 = vmatprep.subr.mxu0 %v167_v0  ;;  %5466 = vst [vmem:[#allocation20_spill] sm:$0xff] %v4200_v61  ;;  %5467 = vst [vmem:[#allocation21_spill] sm:$0xff] %v4205_v62  ;;  %v4212_v63 = vld [vmem:[%s5344_s3 + $0x50] sm:$0xff]  ;;  %v4217_v0 = vld [vmem:[%s5344_s3 + $0x28] sm:$0xff] }
  0x61   :  { %449 = vmatpush2.msra.mxu1 %v102_v1  ;;  %488 = vmatpush1.msra.mxu0 %v166_v5  ;;  %5468 = vst [vmem:[#allocation22_spill] sm:$0xff] %v4212_v63  ;;  %5469 = vst [vmem:[#allocation23_spill] sm:$0xff] %v4217_v0  ;;  %v4224_v1 = vld [vmem:[%s5344_s3 + $0x38] sm:$0xff]  ;;  %v4229_v5 = vld [vmem:[%s5344_s3 + $0x20] sm:$0xff] }
  0x62   :  { %450 = vmatprep.subr.mxu1 %v99_v7  ;;  %489 = vmatprep.subr.mxu0 %v163_v8  ;;  %5470 = vst [vmem:[#allocation24_spill] sm:$0xff] %v4224_v1  ;;  %5471 = vst [vmem:[#allocation25_spill] sm:$0xff] %v4229_v5  ;;  %v4236_v7 = vld [vmem:[%s5344_s3 + $0x30] sm:$0xff]  ;;  %v4241_v8 = vld [vmem:[%s5344_s3 + $0x8] sm:$0xff] }
  0x63   :  { %451 = vmatpush2.msra.mxu1 %v98_v9  ;;  %452 = vmatprep.mubr.f32.mxu1 %v3675_v4  ;;  %v3905_v4 = vld [vmem:[%s5344_s3 + $0x1c8] sm:$0xff]  ;;  %5472 = vst [vmem:[#allocation26_spill] sm:$0xff] %v4236_v7  ;;  %5473 = vst [vmem:[#allocation27_spill] sm:$0xff] %v4241_v8  ;;  %v4248_v9 = vld [vmem:[%s5344_s3 + $0x18] sm:$0xff] }
  0x64   :  { %490 = vmatpush1.msra.mxu0 %v162_v10  ;;  %523 = vmatprep.mubr.f32.mxu0 %v5349_v3  ;;  %5474 = vst [vmem:[#allocation28_spill] sm:$0xff] %v4248_v9  ;;  %v4253_v10 = vld [vmem:[%s5344_s3] sm:$0xff]  ;;  %v4260_v3 = vld [vmem:[%s5344_s3 + $0x10] sm:$0xff] }
  0x65   :  { %453 = vmatmul.mubr.f32.vlgmr.msra.gmra.mxu1 %v3683_v6  ;;  %524 = vmatmul.mubr.f32.vlgmr.msra.gmra.mxu0 %v3483_v2  ;;  %v3917_v6 = vld [vmem:[%s5344_s3 + $0x1c0] sm:$0xff]  ;;  %v3924_v2 = vld [vmem:[%s5344_s3 + $0x1d0] sm:$0xff]  ;;  %5475 = vst [vmem:[#allocation29_spill] sm:$0xff] %v4253_v10  ;;  %5476 = vst [vmem:[#allocation30_spill] sm:$0xff] %v4260_v3 }
  0x66   :  { %622 = vmatprep.subr.mxu0 %v3882_v11  ;;  %693 = vmatprep.subr.mxu1 %v3888_v12 }
  0x67   :  { %623 = vmatpush1.msra.mxu0 %v3893_v13  ;;  %694 = vmatpush1.msra.mxu1 %v3900_v14 }
  0x68   :  { %624 = vmatprep.subr.mxu0 %v3905_v4  ;;  %695 = vmatprep.subr.mxu1 %v3912_v15 }
  0x69   :  { %625 = vmatpush1.msra.mxu0 %v3917_v6  ;;  %696 = vmatpush1.msra.mxu1 %v3924_v2 }
  0x6a   :  { %626 = vmatprep.subr.mxu0 %v3929_v16  ;;  %697 = vmatprep.subr.mxu1 %v3936_v17 }
  0x6b   :  { %627 = vmatpush1.msra.mxu0 %v3941_v18  ;;  %698 = vmatpush1.msra.mxu1 %v3948_v19 }
  0x6c   :  { %628 = vmatprep.subr.mxu0 %v3953_v20  ;;  %699 = vmatprep.subr.mxu1 %v3960_v21 }
  0x6d   :  { %629 = vmatpush1.msra.mxu0 %v3965_v22  ;;  %700 = vmatpush1.msra.mxu1 %v3972_v23 }
  0x6e   :  { %630 = vmatprep.subr.mxu0 %v3977_v24  ;;  %701 = vmatprep.subr.mxu1 %v3984_v25 }
  0x6f   :  { %631 = vmatpush1.msra.mxu0 %v3989_v26  ;;  %702 = vmatpush1.msra.mxu1 %v3996_v27 }
  0x70   :  { %632 = vmatprep.subr.mxu0 %v4001_v28  ;;  %703 = vmatprep.subr.mxu1 %v4008_v29 }
  0x71   :  { %633 = vmatpush1.msra.mxu0 %v4013_v30  ;;  %704 = vmatpush1.msra.mxu1 %v4020_v31 }
  0x72   :  { %634 = vmatprep.subr.mxu0 %v4025_v32  ;;  %705 = vmatprep.subr.mxu1 %v4032_v33 }
  0x73   :  { %635 = vmatpush1.msra.mxu0 %v4037_v34  ;;  %706 = vmatpush1.msra.mxu1 %v4044_v35 }
  0x74   :  { %636 = vmatprep.subr.mxu0 %v4049_v36  ;;  %707 = vmatprep.subr.mxu1 %v4056_v37 }
  0x75   :  { %637 = vmatpush1.msra.mxu0 %v4061_v38  ;;  %708 = vmatpush1.msra.mxu1 %v4068_v39 }
  0x76   :  { %638 = vmatprep.subr.mxu0 %v4073_v40  ;;  %709 = vmatprep.subr.mxu1 %v4080_v41 }
  0x77   :  { %639 = vmatpush1.msra.mxu0 %v4085_v42  ;;  %710 = vmatpush1.msra.mxu1 %v4092_v43 }
  0x78   :  { %640 = vmatprep.subr.mxu0 %v4097_v44  ;;  %711 = vmatprep.subr.mxu1 %v4104_v45 }
  0x79   :  { %641 = vmatpush1.msra.mxu0 %v4109_v46  ;;  %712 = vmatpush1.msra.mxu1 %v4116_v47 }
  0x7a   :  { %642 = vmatprep.subr.mxu0 %v4121_v48  ;;  %713 = vmatprep.subr.mxu1 %v4128_v49 }
  0x7b   :  { %643 = vmatpush1.msra.mxu0 %v4133_v50  ;;  %714 = vmatpush1.msra.mxu1 %v4140_v51 }
  0x7c   :  { %644 = vmatprep.subr.mxu0 %v4145_v52  ;;  %715 = vmatprep.subr.mxu1 %v4152_v53 }
  0x7d   :  { %645 = vmatpush1.msra.mxu0 %v4157_v54  ;;  %716 = vmatpush1.msra.mxu1 %v4164_v55 }
  0x7e   :  { %646 = vmatprep.subr.mxu0 %v4169_v56  ;;  %717 = vmatprep.subr.mxu1 %v4176_v57 }
  0x7f   :  { %647 = vmatpush1.msra.mxu0 %v4181_v58  ;;  %718 = vmatpush1.msra.mxu1 %v4188_v59 }
  0x80   :  { %648 = vmatprep.subr.mxu0 %v4193_v60  ;;  %719 = vmatprep.subr.mxu1 %v4200_v61 }
  0x81   :  { %649 = vmatpush1.msra.mxu0 %v4205_v62  ;;  %720 = vmatpush1.msra.mxu1 %v4212_v63  ;;  %v5477_v63 = vmov 0.0  }
  0x82   :  { %650 = vmatprep.subr.mxu0 %v4217_v0  ;;  %721 = vmatprep.subr.mxu1 %v4224_v1  ;;  %v555_v0 = vld [vmem:[#allocation2] sm:$0x1] }
  0x83   :  { %651 = vmatpush1.msra.mxu0 %v4229_v5  ;;  %722 = vmatpush1.msra.mxu1 %v4236_v7 }
  0x84   :  { %652 = vmatprep.subr.mxu0 %v4241_v8  ;;  %723 = vmatprep.subr.mxu1 %v4248_v9 }
  0x85   :  { %653 = vmatpush1.msra.mxu0 %v4253_v10  ;;  %686 = vmatprep.mubr.f32.mxu0 %v5477_v63 }
  0x86   :  { %724 = vmatpush1.msra.mxu1 %v4260_v3  ;;  %757 = vmatprep.mubr.f32.mxu1 %v5477_v63 }
  0x87   :  { %687 = vmatmul.mubr.f32.vlgmr.msra.gmra.mxu0 %v555_v0  ;;  %758 = vmatmul.mubr.f32.vlgmr.msra.gmra.mxu1 %v555_v0  ;;  %v5478_v0 = vld [vmem:[#allocation22_spill] sm:$0xff] }
  0x88   :  { %945 = vmatprep.subr.mxu0 %v3882_v11  ;;  %1016 = vmatprep.subr.mxu1 %v3888_v12 }
  0x89   :  { %946 = vmatpush1.msra.mxu0 %v3893_v13  ;;  %1017 = vmatpush1.msra.mxu1 %v3900_v14 }
  0x8a   :  { %947 = vmatprep.subr.mxu0 %v3905_v4  ;;  %1018 = vmatprep.subr.mxu1 %v3912_v15 }
  0x8b   :  { %948 = vmatpush1.msra.mxu0 %v3917_v6  ;;  %1019 = vmatpush1.msra.mxu1 %v3924_v2 }
  0x8c   :  { %949 = vmatprep.subr.mxu0 %v3929_v16  ;;  %1020 = vmatprep.subr.mxu1 %v3936_v17 }
  0x8d   :  { %950 = vmatpush1.msra.mxu0 %v3941_v18  ;;  %1021 = vmatpush1.msra.mxu1 %v3948_v19 }
  0x8e   :  { %951 = vmatprep.subr.mxu0 %v3953_v20  ;;  %1022 = vmatprep.subr.mxu1 %v3960_v21 }
  0x8f   :  { %952 = vmatpush1.msra.mxu0 %v3965_v22  ;;  %1023 = vmatpush1.msra.mxu1 %v3972_v23 }
  0x90   :  { %953 = vmatprep.subr.mxu0 %v3977_v24  ;;  %1024 = vmatprep.subr.mxu1 %v3984_v25 }
  0x91   :  { %954 = vmatpush1.msra.mxu0 %v3989_v26  ;;  %1025 = vmatpush1.msra.mxu1 %v3996_v27 }
  0x92   :  { %955 = vmatprep.subr.mxu0 %v4001_v28  ;;  %1026 = vmatprep.subr.mxu1 %v4008_v29 }
  0x93   :  { %956 = vmatpush1.msra.mxu0 %v4013_v30  ;;  %1027 = vmatpush1.msra.mxu1 %v4020_v31 }
  0x94   :  { %957 = vmatprep.subr.mxu0 %v4025_v32  ;;  %1028 = vmatprep.subr.mxu1 %v4032_v33 }
  0x95   :  { %958 = vmatpush1.msra.mxu0 %v4037_v34  ;;  %1029 = vmatpush1.msra.mxu1 %v4044_v35 }
  0x96   :  { %959 = vmatprep.subr.mxu0 %v4049_v36  ;;  %1030 = vmatprep.subr.mxu1 %v4056_v37 }
  0x97   :  { %960 = vmatpush1.msra.mxu0 %v4061_v38  ;;  %1031 = vmatpush1.msra.mxu1 %v4068_v39 }
  0x98   :  { %961 = vmatprep.subr.mxu0 %v4073_v40  ;;  %1032 = vmatprep.subr.mxu1 %v4080_v41 }
  0x99   :  { %962 = vmatpush1.msra.mxu0 %v4085_v42  ;;  %1033 = vmatpush1.msra.mxu1 %v4092_v43 }
  0x9a   :  { %963 = vmatprep.subr.mxu0 %v4097_v44  ;;  %1034 = vmatprep.subr.mxu1 %v4104_v45 }
  0x9b   :  { %964 = vmatpush1.msra.mxu0 %v4109_v46  ;;  %1035 = vmatpush1.msra.mxu1 %v4116_v47 }
  0x9c   :  { %965 = vmatprep.subr.mxu0 %v4121_v48  ;;  %1036 = vmatprep.subr.mxu1 %v4128_v49 }
  0x9d   :  { %966 = vmatpush1.msra.mxu0 %v4133_v50  ;;  %1037 = vmatpush1.msra.mxu1 %v4140_v51 }
  0x9e   :  { %967 = vmatprep.subr.mxu0 %v4145_v52  ;;  %1038 = vmatprep.subr.mxu1 %v4152_v53  ;;  %v5479_v53 = vld [vmem:[#allocation23_spill] sm:$0xff] }
  0x9f   :  { %968 = vmatpush1.msra.mxu0 %v4157_v54  ;;  %1039 = vmatpush1.msra.mxu1 %v4164_v55 }
  0xa0   :  { %969 = vmatprep.subr.mxu0 %v4169_v56  ;;  %1040 = vmatprep.subr.mxu1 %v4176_v57 }
  0xa1   :  { %970 = vmatpush1.msra.mxu0 %v4181_v58  ;;  %1041 = vmatpush1.msra.mxu1 %v4188_v59 }
  0xa2   :  { %971 = vmatprep.subr.mxu0 %v4193_v60  ;;  %1042 = vmatprep.subr.mxu1 %v4200_v61 }
  0xa3   :  { %972 = vmatpush1.msra.mxu0 %v4205_v62  ;;  %1043 = vmatpush1.msra.mxu1 %v5478_v0 }
  0xa4   :  { %973 = vmatprep.subr.mxu0 %v5479_v53  ;;  %1044 = vmatprep.subr.mxu1 %v4224_v1  ;;  %v226_v1 = vlaneseq }
  0xa5   :  { %974 = vmatpush1.msra.mxu0 %v4229_v5  ;;  %1045 = vmatpush1.msra.mxu1 %v4236_v7 }
  0xa6   :  { %975 = vmatprep.subr.mxu0 %v4241_v8  ;;  %1046 = vmatprep.subr.mxu1 %v4248_v9  ;;  %v227_v5 = vshrl.u32 %v226_v1, 7  ;;  %v224_v9 = vld [vmem:[%s5345_s2] sm:$0xf] }
  0xa7   :  { %976 = vmatpush1.msra.mxu0 %v4253_v10  ;;  %1009 = vmatprep.mubr.f32.mxu0 %v5477_v63 }
  0xa8   :  { %1047 = vmatpush1.msra.mxu1 %v4260_v3  ;;  %1080 = vmatprep.mubr.f32.mxu1 %v5477_v63  ;;  %v4337_v53 = vsub.s32 0, %v227_v5  ;;  %v4342_v8 = vsub.s32 1, %v227_v5  ;;  %v4346_v60 = vsub.s32 2, %v227_v5  ;;  %v4348_v59 = vsub.s32 3, %v227_v5 }
  0xa9   :  { %1239 = vmatprep.subr.mxu0 %v3882_v11  ;;  %1310 = vmatprep.subr.mxu1 %v3888_v12 }
  0xaa   :  { %v229_v10 = vrot.slane %v224_v9, %v4337_v53  ;;  %v233_v3 = vrot.slane %v224_v9, %v4342_v8  ;;  %v237_v58 = vrot.slane %v224_v9, %v4346_v60  ;;  %v241_v57 = vrot.slane %v224_v9, %v4348_v59 }
  0xe3   :  { %v383_v7 = vpop.f32.mrf.mxu1 }
  0xe5   :  { %v385_v61 = vpop.f32.mrf.mxu1 }
 0x103   :  { %v312_v63 = vpop.f32.mrf.mxu0 }
 0x104   :  { %v313_v0 = vadd.f32 %v312_v63, %v229_v10 }
 0x105   :  { %v314_v11 = vpop.f32.mrf.mxu0 }
 0x106   :  { %v384_v62 = vadd.f32 %v383_v7, %v313_v0  ;;  %v315_v12 = vadd.f32 %v314_v11, %v233_v3  ;;  %v3243_v11 = vmov 1966171168  }
 0x108   :  { %530 = vst [vmem:[#allocation4] sm:$0xff] %v384_v62  ;;  %v386_v1 = vadd.f32 %v385_v61, %v315_v12  ;;  %v771_v12 = vunpack.c.l.s4 %v3243_v11  ;;  %v3244_v62 = vmov 0.5  }
 0x109   :  { %v798_v0 = vcombine.low %v3244_v62, %v3244_v62 }
 0x10a   :  { %531 = vst [vmem:[#allocation4 + $0x8] sm:$0xff] %v386_v1  ;;  %v772_v61 = vunpack.c.0.s8 %v771_v12  ;;  %v3245_v1 = vmov 1.0  }
 0x10b   :  { %v799_v51 = vcombine.low %v3245_v1, %v3244_v62 }
 0x10c   :  { %v4352_v50 = vsub.s32 %v772_v61, %v227_v5 }
 0x125   :  { %v454_v56 = vpop.f32.mrf.mxu1  ;;  %v525_v54 = vpop.f32.mrf.mxu0 }
 0x126   :  { %v455_v55 = vadd.f32 %v454_v56, %v237_v58  ;;  %v806_v58 = vrot.slane %v798_v0, %v4352_v50 }
 0x127   :  { %v456_v52 = vpop.f32.mrf.mxu1  ;;  %v527_v7 = vpop.f32.mrf.mxu0 }
 0x128   :  { %v526_v63 = vadd.f32 %v525_v54, %v455_v55  ;;  %v457_v10 = vadd.f32 %v456_v52, %v241_v57  ;;  %v813_v52 = vrot.slane %v799_v51, %v4352_v50 }
 0x12a   :  { %532 = vst [vmem:[#allocation4 + $0x10] sm:$0xff] %v526_v63  ;;  %v528_v3 = vadd.f32 %v527_v7, %v457_v10  ;;  %v814_v7 = vcombine.low %v806_v58, %v813_v52 }
 0x12c   :  { %533 = vst [vmem:[#allocation4 + $0x18] sm:$0xff] %v528_v3  ;;  %v4360_v5 = vrot.slane %v814_v7, %v4352_v50  ;;  %v5480_v7 = vld [vmem:[#allocation8_spill] sm:$0xff] }
 0x133   :  { %v557_v12 = vld [vmem:[#allocation4] ss:$8 sm:$0xf] }
 0x147   :  { %v688_v9 = vpop.f32.mrf.mxu0  ;;  %v759_v49 = vpop.f32.mrf.mxu1 }
 0x149   :  { %v690_v56 = vpop.f32.mrf.mxu0  ;;  %v761_v55 = vpop.f32.mrf.mxu1 }
 0x14a   :  { %v768_v54 = vcombine.low %v688_v9, %v690_v56  ;;  %v769_v57 = vcombine.low %v759_v49, %v761_v55  ;;  %v556_v49 = vld [vmem:[#allocation3] sm:$0x1] }
 0x14c   :  { %v776_v63 = vrot.slane %v768_v54, %v4352_v50  ;;  %v783_v10 = vrot.slane %v769_v57, %v4352_v50 }
 0x14e   :  { %v784_v3 = vcombine.low %v776_v63, %v783_v10 }
 0x150   :  { %v791_v11 = vrot.slane %v784_v3, %v4352_v50  ;;  %v5481_v3 = vld [vmem:[#allocation9_spill] sm:$0xff] }
 0x152   :  { %v793_v61 = vadd.f32 %v791_v11, %v557_v12  ;;  %v5482_v11 = vld [vmem:[#allocation10_spill] sm:$0xff]  ;;  %v5483_v12 = vld [vmem:[#allocation11_spill] sm:$0xff] }
 0x154   :  { %v823_v62 = vmul.f32 %v4360_v5, %v793_v61  ;;  %v5484_v61 = vld [vmem:[#allocation12_spill] sm:$0xff] }
 0x156   :  { %3210 = vtanh.f32 %v823_v62  ;;  %v5485_v62 = vld [vmem:[#allocation13_spill] sm:$0xff] }
 0x163   :  { %v3211_v51 = vpop.eup %3210 }
 0x164   :  { %v825_v0 = vadd.f32 1.0, %v3211_v51  ;;  %v839_v9 = vrot.slane %v3211_v51, %v4346_v60  ;;  %v5486_v51 = vld [vmem:[#allocation14_spill] sm:$0xff] }
 0x166   :  { %v826_v1 = vmul.f32 0.5, %v825_v0  ;;  %v5487_v0 = vld [vmem:[#allocation15_spill] sm:$0xff] }
 0x168   :  { %v852_v56 = vrot.slane %v826_v1, %v4337_v53  ;;  %v856_v58 = vrot.slane %v826_v1, %v4342_v8  ;;  %v864_v57 = vrot.slane %v826_v1, %v4348_v59  ;;  %v5488_v1 = vld [vmem:[#allocation16_spill] sm:$0xff] }
 0x16a   :  { %v873_v52 = vmul.f32 %v856_v58, %v556_v49  ;;  %v874_v54 = vmul.f32 %v852_v56, %v839_v9  ;;  %v5489_v49 = vld [vmem:[#allocation17_spill] sm:$0xff]  ;;  %v5490_v9 = vld [vmem:[#allocation18_spill] sm:$0xff]  ;;  %v5491_v56 = vld [vmem:[#allocation19_spill] sm:$0xff] }
 0x16b   :  { %v5492_v58 = vld [vmem:[#allocation20_spill] sm:$0xff] }
 0x16c   :  { %v4366_v55 = vadd.f32 %v874_v54, %v873_v52  ;;  %v5493_v52 = vld [vmem:[#allocation21_spill] sm:$0xff]  ;;  %v5494_v54 = vld [vmem:[#allocation22_spill] sm:$0xff] }
 0x16e   :  { %3212 = vtanh.f32 %v4366_v55 }
 0x17b   :  { %v3213_v63 = vpop.eup %3212 }
 0x17c   :  { %v877_v10 = vmul.f32 %v3213_v63, %v864_v57  ;;  %v5495_v57 = vld [vmem:[#allocation23_spill] sm:$0xff]  ;;  %v5496_v63 = vld [vmem:[#allocation24_spill] sm:$0xff] }
 0x17e   :  { %878 = vst [vmem:[#allocation5] sm:$0x1] %v877_v10  ;;  %1010 = vmatmul.mubr.f32.vlgmr.msra.gmra.mxu0 %v877_v10  ;;  %1081 = vmatmul.mubr.f32.vlgmr.msra.gmra.mxu1 %v877_v10  ;;  %v5497_v10 = vld [vmem:[#allocation25_spill] sm:$0xff] }
 0x17f   :  { %1240 = vmatpush1.msra.mxu0 %v3893_v13  ;;  %1311 = vmatpush1.msra.mxu1 %v3900_v14 }
 0x180   :  { %1241 = vmatprep.subr.mxu0 %v3905_v4  ;;  %1312 = vmatprep.subr.mxu1 %v3912_v15 }
 0x181   :  { %1242 = vmatpush1.msra.mxu0 %v3917_v6  ;;  %1313 = vmatpush1.msra.mxu1 %v3924_v2 }
 0x182   :  { %1243 = vmatprep.subr.mxu0 %v3929_v16  ;;  %1314 = vmatprep.subr.mxu1 %v3936_v17 }
 0x183   :  { %1244 = vmatpush1.msra.mxu0 %v3941_v18  ;;  %1315 = vmatpush1.msra.mxu1 %v3948_v19 }
 0x184   :  { %1245 = vmatprep.subr.mxu0 %v3953_v20  ;;  %1316 = vmatprep.subr.mxu1 %v3960_v21 }
 0x185   :  { %1246 = vmatpush1.msra.mxu0 %v3965_v22  ;;  %1317 = vmatpush1.msra.mxu1 %v3972_v23 }
 0x186   :  { %1247 = vmatprep.subr.mxu0 %v3977_v24  ;;  %1318 = vmatprep.subr.mxu1 %v3984_v25 }
 0x187   :  { %1248 = vmatpush1.msra.mxu0 %v3989_v26  ;;  %1319 = vmatpush1.msra.mxu1 %v3996_v27 }
 0x188   :  { %1249 = vmatprep.subr.mxu0 %v4001_v28  ;;  %1320 = vmatprep.subr.mxu1 %v4008_v29 }
 0x189   :  { %1250 = vmatpush1.msra.mxu0 %v4013_v30  ;;  %1321 = vmatpush1.msra.mxu1 %v4020_v31 }
 0x18a   :  { %1251 = vmatprep.subr.mxu0 %v4025_v32  ;;  %1322 = vmatprep.subr.mxu1 %v4032_v33 }
 0x18b   :  { %1252 = vmatpush1.msra.mxu0 %v4037_v34  ;;  %1323 = vmatpush1.msra.mxu1 %v4044_v35 }
 0x18c   :  { %1253 = vmatprep.subr.mxu0 %v4049_v36  ;;  %1324 = vmatprep.subr.mxu1 %v4056_v37 }
 0x18d   :  { %1254 = vmatpush1.msra.mxu0 %v4061_v38  ;;  %1325 = vmatpush1.msra.mxu1 %v4068_v39 }
 0x18e   :  { %1255 = vmatprep.subr.mxu0 %v4073_v40  ;;  %1326 = vmatprep.subr.mxu1 %v4080_v41 }
 0x18f   :  { %1256 = vmatpush1.msra.mxu0 %v4085_v42  ;;  %1327 = vmatpush1.msra.mxu1 %v4092_v43 }
 0x190   :  { %1257 = vmatprep.subr.mxu0 %v4097_v44  ;;  %1328 = vmatprep.subr.mxu1 %v4104_v45 }
 0x191   :  { %1258 = vmatpush1.msra.mxu0 %v4109_v46  ;;  %1329 = vmatpush1.msra.mxu1 %v4116_v47 }
 0x192   :  { %1259 = vmatprep.subr.mxu0 %v4121_v48  ;;  %1330 = vmatprep.subr.mxu1 %v5480_v7 }
 0x193   :  { %1260 = vmatpush1.msra.mxu0 %v5481_v3  ;;  %1331 = vmatpush1.msra.mxu1 %v5482_v11 }
 0x194   :  { %1261 = vmatprep.subr.mxu0 %v5483_v12  ;;  %1332 = vmatprep.subr.mxu1 %v5484_v61 }
 0x195   :  { %1262 = vmatpush1.msra.mxu0 %v5485_v62  ;;  %1333 = vmatpush1.msra.mxu1 %v5486_v51 }
 0x196   :  { %1263 = vmatprep.subr.mxu0 %v5487_v0  ;;  %1334 = vmatprep.subr.mxu1 %v5488_v1  ;;  %v5498_v0 = vld [vmem:[#allocation26_spill] sm:$0xff]  ;;  %v5499_v1 = vld [vmem:[#allocation27_spill] sm:$0xff] }
 0x197   :  { %1264 = vmatpush1.msra.mxu0 %v5489_v49  ;;  %1335 = vmatpush1.msra.mxu1 %v5490_v9  ;;  %v5500_v49 = vld [vmem:[#allocation28_spill] sm:$0xff]  ;;  %v5501_v9 = vld [vmem:[#allocation29_spill] sm:$0xff] }
 0x198   :  { %1265 = vmatprep.subr.mxu0 %v5491_v56  ;;  %1336 = vmatprep.subr.mxu1 %v5492_v58  ;;  %v5502_v56 = vmov 0.0   ;;  %v5503_v58 = vld [vmem:[#allocation30_spill] sm:$0xff] }
 0x199   :  { %1266 = vmatpush1.msra.mxu0 %v5493_v52  ;;  %1337 = vmatpush1.msra.mxu1 %v5494_v54  ;;  %v5504_v54 = vld [vmem:[#allocation6_spill] sm:$0xff] }
 0x19a   :  { %1267 = vmatprep.subr.mxu0 %v5495_v57  ;;  %1338 = vmatprep.subr.mxu1 %v5496_v63  ;;  %v5505_v57 = vld [vmem:[#allocation7_spill] sm:$0xff] }
 0x19b   :  { %1268 = vmatpush1.msra.mxu0 %v5497_v10  ;;  %1339 = vmatpush1.msra.mxu1 %v5498_v0 }
 0x19c   :  { %1269 = vmatprep.subr.mxu0 %v5499_v1  ;;  %1340 = vmatprep.subr.mxu1 %v5500_v49 }
 0x19d   :  { %1270 = vmatpush1.msra.mxu0 %v5501_v9  ;;  %1303 = vmatprep.mubr.f32.mxu0 %v5502_v56 }
 0x19e   :  { %1341 = vmatpush1.msra.mxu1 %v5503_v58  ;;  %1374 = vmatprep.mubr.f32.mxu1 %v5502_v56  ;;  %v880_v58 = vld [vmem:[#allocation4 + $0x1] ss:$8 sm:$0xf] }
 0x19f   :  { %1533 = vmatprep.subr.mxu0 %v5504_v54  ;;  %1604 = vmatprep.subr.mxu1 %v5505_v57 }
 0x23e   :  { %v1011_v63 = vpop.f32.mrf.mxu0  ;;  %v1082_v10 = vpop.f32.mrf.mxu1 }
 0x240   :  { %v1013_v52 = vpop.f32.mrf.mxu0  ;;  %v1084_v0 = vpop.f32.mrf.mxu1 }
 0x241   :  { %v1091_v51 = vcombine.low %v1011_v63, %v1013_v52  ;;  %v1092_v1 = vcombine.low %v1082_v10, %v1084_v0 }
 0x243   :  { %v1099_v49 = vrot.slane %v1091_v51, %v4352_v50  ;;  %v1106_v9 = vrot.slane %v1092_v1, %v4352_v50 }
 0x245   :  { %v1107_v62 = vcombine.low %v1099_v49, %v1106_v9 }
 0x247   :  { %v1114_v61 = vrot.slane %v1107_v62, %v4352_v50 }
 0x249   :  { %v1116_v12 = vadd.f32 %v1114_v61, %v880_v58 }
 0x24b   :  { %v1117_v56 = vmul.f32 %v1116_v12, %v4360_v5 }
 0x24d   :  { %3214 = vtanh.f32 %v1117_v56 }
 0x25a   :  { %v3215_v54 = vpop.eup %3214 }
 0x25b   :  { %v1119_v57 = vadd.f32 1.0, %v3215_v54  ;;  %v1133_v3 = vrot.slane %v3215_v54, %v4346_v60  ;;  %v4529_v54 = vld [vmem:[%s5344_s3 + $0x1e8] sm:$0xff] }
 0x25c   :  { %5529 = vst [vmem:[#allocation8_spill] sm:$0xff] %v4529_v54 }
 0x25d   :  { %v1120_v11 = vmul.f32 0.5, %v1119_v57  ;;  %v4534_v57 = vld [vmem:[%s5344_s3 + $0x1f8] sm:$0xff] }
 0x25e   :  { %5530 = vst [vmem:[#allocation6_spill] sm:$0xff] %v4534_v57 }
 0x25f   :  { %v1146_v52 = vrot.slane %v1120_v11, %v4337_v53  ;;  %v1150_v0 = vrot.slane %v1120_v11, %v4342_v8  ;;  %v1158_v61 = vrot.slane %v1120_v11, %v4348_v59 }
 0x261   :  { %v1167_v51 = vmul.f32 %v1150_v0, %v4366_v55  ;;  %v1168_v1 = vmul.f32 %v1146_v52, %v1133_v3  ;;  %v4539_v52 = vld [vmem:[%s5344_s3 + $0x1e0] sm:$0xff]  ;;  %v4546_v0 = vld [vmem:[%s5344_s3 + $0x1f0] sm:$0xff] }
 0x263   :  { %v4444_v49 = vadd.f32 %v1168_v1, %v1167_v51  ;;  %v4551_v51 = vld [vmem:[%s5344_s3 + $0x1c8] sm:$0xff]  ;;  %v4556_v1 = vld [vmem:[%s5344_s3 + $0x1d8] sm:$0xff] }
 0x265   :  { %3216 = vtanh.f32 %v4444_v49 }
 0x272   :  { %v3217_v12 = vpop.eup %3216 }
 0x273   :  { %v1171_v62 = vmul.f32 %v3217_v12, %v1158_v61  ;;  %v4568_v61 = vld [vmem:[%s5344_s3 + $0x1d0] sm:$0xff]  ;;  %v4573_v12 = vld [vmem:[%s5344_s3 + $0x1a8] sm:$0xff] }
 0x275   :  { %1172 = vst [vmem:[#allocation5 + $0x1] sm:$0x1] %v1171_v62  ;;  %1304 = vmatmul.mubr.f32.vlgmr.msra.gmra.mxu0 %v1171_v62  ;;  %1375 = vmatmul.mubr.f32.vlgmr.msra.gmra.mxu1 %v1171_v62  ;;  %v4580_v62 = vld [vmem:[%s5344_s3 + $0x1b8] sm:$0xff] }
 0x276   :  { %1534 = vmatpush1.msra.mxu0 %v3893_v13  ;;  %1605 = vmatpush1.msra.mxu1 %v3900_v14  ;;  %v5506_v13 = vld [vmem:[#allocation9_spill] sm:$0xff]  ;;  %v5507_v14 = vld [vmem:[#allocation10_spill] sm:$0xff] }
 0x277   :  { %1535 = vmatprep.subr.mxu0 %v3905_v4  ;;  %1606 = vmatprep.subr.mxu1 %v3912_v15  ;;  %v5508_v4 = vld [vmem:[#allocation11_spill] sm:$0xff]  ;;  %v5509_v15 = vld [vmem:[#allocation12_spill] sm:$0xff] }
 0x278   :  { %1536 = vmatpush1.msra.mxu0 %v3917_v6  ;;  %1607 = vmatpush1.msra.mxu1 %v3924_v2  ;;  %v5510_v6 = vld [vmem:[#allocation13_spill] sm:$0xff]  ;;  %v5511_v2 = vld [vmem:[#allocation14_spill] sm:$0xff] }
 0x279   :  { %1537 = vmatprep.subr.mxu0 %v3929_v16  ;;  %1608 = vmatprep.subr.mxu1 %v3936_v17  ;;  %v5512_v16 = vld [vmem:[#allocation15_spill] sm:$0xff]  ;;  %v5513_v17 = vld [vmem:[#allocation16_spill] sm:$0xff] }
 0x27a   :  { %1538 = vmatpush1.msra.mxu0 %v3941_v18  ;;  %1609 = vmatpush1.msra.mxu1 %v3948_v19  ;;  %v5514_v18 = vld [vmem:[#allocation17_spill] sm:$0xff]  ;;  %v5515_v19 = vld [vmem:[#allocation18_spill] sm:$0xff] }
 0x27b   :  { %1539 = vmatprep.subr.mxu0 %v3953_v20  ;;  %1610 = vmatprep.subr.mxu1 %v3960_v21  ;;  %v5516_v20 = vld [vmem:[#allocation19_spill] sm:$0xff]  ;;  %v5517_v21 = vld [vmem:[#allocation20_spill] sm:$0xff] }
 0x27c   :  { %1540 = vmatpush1.msra.mxu0 %v3965_v22  ;;  %1611 = vmatpush1.msra.mxu1 %v3972_v23  ;;  %v5518_v22 = vld [vmem:[#allocation21_spill] sm:$0xff]  ;;  %v5519_v23 = vld [vmem:[#allocation22_spill] sm:$0xff] }
 0x27d   :  { %1541 = vmatprep.subr.mxu0 %v3977_v24  ;;  %1612 = vmatprep.subr.mxu1 %v3984_v25  ;;  %v5520_v24 = vld [vmem:[#allocation23_spill] sm:$0xff]  ;;  %v5521_v25 = vld [vmem:[#allocation24_spill] sm:$0xff] }
 0x27e   :  { %1542 = vmatpush1.msra.mxu0 %v3989_v26  ;;  %1613 = vmatpush1.msra.mxu1 %v3996_v27  ;;  %v5522_v26 = vld [vmem:[#allocation25_spill] sm:$0xff]  ;;  %v5523_v27 = vld [vmem:[#allocation26_spill] sm:$0xff] }
 0x27f   :  { %1543 = vmatprep.subr.mxu0 %v4001_v28  ;;  %1614 = vmatprep.subr.mxu1 %v4008_v29  ;;  %v5524_v28 = vld [vmem:[#allocation27_spill] sm:$0xff]  ;;  %v5525_v29 = vld [vmem:[#allocation28_spill] sm:$0xff] }
 0x280   :  { %1544 = vmatpush1.msra.mxu0 %v4013_v30  ;;  %1615 = vmatpush1.msra.mxu1 %v4020_v31  ;;  %v5526_v30 = vld [vmem:[#allocation29_spill] sm:$0xff]  ;;  %v5527_v31 = vmov 0.0  }
 0x281   :  { %1545 = vmatprep.subr.mxu0 %v4025_v32  ;;  %1616 = vmatprep.subr.mxu1 %v4032_v33  ;;  %v5528_v32 = vld [vmem:[#allocation30_spill] sm:$0xff] }
 0x282   :  { %1546 = vmatpush1.msra.mxu0 %v4037_v34  ;;  %1617 = vmatpush1.msra.mxu1 %v4044_v35 }
 0x283   :  { %1547 = vmatprep.subr.mxu0 %v4049_v36  ;;  %1618 = vmatprep.subr.mxu1 %v4056_v37 }
 0x284   :  { %1548 = vmatpush1.msra.mxu0 %v4061_v38  ;;  %1619 = vmatpush1.msra.mxu1 %v4068_v39 }
 0x285   :  { %1549 = vmatprep.subr.mxu0 %v4073_v40  ;;  %1620 = vmatprep.subr.mxu1 %v4080_v41 }
 0x286   :  { %1550 = vmatpush1.msra.mxu0 %v4085_v42  ;;  %1621 = vmatpush1.msra.mxu1 %v4092_v43  ;;  %v1174_v43 = vld [vmem:[#allocation4 + $0x2] ss:$8 sm:$0xf] }
 0x287   :  { %1551 = vmatprep.subr.mxu0 %v4097_v44  ;;  %1622 = vmatprep.subr.mxu1 %v4104_v45 }
 0x288   :  { %1552 = vmatpush1.msra.mxu0 %v4109_v46  ;;  %1623 = vmatpush1.msra.mxu1 %v4116_v47 }
 0x289   :  { %1553 = vmatprep.subr.mxu0 %v4121_v48  ;;  %1624 = vmatprep.subr.mxu1 %v5480_v7 }
 0x28a   :  { %1554 = vmatpush1.msra.mxu0 %v5506_v13  ;;  %1625 = vmatpush1.msra.mxu1 %v5507_v14  ;;  %v4585_v13 = vld [vmem:[%s5344_s3 + $0x1a0] sm:$0xff]  ;;  %v4590_v14 = vld [vmem:[%s5344_s3 + $0x1b0] sm:$0xff] }
 0x28b   :  { %1555 = vmatprep.subr.mxu0 %v5508_v4  ;;  %1626 = vmatprep.subr.mxu1 %v5509_v15  ;;  %v4597_v4 = vld [vmem:[%s5344_s3 + $0x188] sm:$0xff]  ;;  %v4602_v15 = vld [vmem:[%s5344_s3 + $0x198] sm:$0xff] }
 0x28c   :  { %1556 = vmatpush1.msra.mxu0 %v5510_v6  ;;  %1627 = vmatpush1.msra.mxu1 %v5511_v2  ;;  %v4609_v6 = vld [vmem:[%s5344_s3 + $0x180] sm:$0xff]  ;;  %v4614_v2 = vld [vmem:[%s5344_s3 + $0x190] sm:$0xff] }
 0x28d   :  { %1557 = vmatprep.subr.mxu0 %v5512_v16  ;;  %1628 = vmatprep.subr.mxu1 %v5513_v17  ;;  %v4621_v16 = vld [vmem:[%s5344_s3 + $0x168] sm:$0xff]  ;;  %v4626_v17 = vld [vmem:[%s5344_s3 + $0x178] sm:$0xff] }
 0x28e   :  { %1558 = vmatpush1.msra.mxu0 %v5514_v18  ;;  %1629 = vmatpush1.msra.mxu1 %v5515_v19  ;;  %v4633_v18 = vld [vmem:[%s5344_s3 + $0x160] sm:$0xff]  ;;  %v4638_v19 = vld [vmem:[%s5344_s3 + $0x170] sm:$0xff] }
 0x28f   :  { %1559 = vmatprep.subr.mxu0 %v5516_v20  ;;  %1630 = vmatprep.subr.mxu1 %v5517_v21  ;;  %v4645_v20 = vld [vmem:[%s5344_s3 + $0x148] sm:$0xff]  ;;  %v4650_v21 = vld [vmem:[%s5344_s3 + $0x158] sm:$0xff] }
 0x290   :  { %1560 = vmatpush1.msra.mxu0 %v5518_v22  ;;  %1631 = vmatpush1.msra.mxu1 %v5519_v23  ;;  %v4657_v22 = vld [vmem:[%s5344_s3 + $0x140] sm:$0xff]  ;;  %v4662_v23 = vld [vmem:[%s5344_s3 + $0x150] sm:$0xff] }
 0x291   :  { %1561 = vmatprep.subr.mxu0 %v5520_v24  ;;  %1632 = vmatprep.subr.mxu1 %v5521_v25  ;;  %v4669_v24 = vld [vmem:[%s5344_s3 + $0x128] sm:$0xff]  ;;  %v4674_v25 = vld [vmem:[%s5344_s3 + $0x138] sm:$0xff] }
 0x292   :  { %1562 = vmatpush1.msra.mxu0 %v5522_v26  ;;  %1633 = vmatpush1.msra.mxu1 %v5523_v27  ;;  %v4681_v26 = vld [vmem:[%s5344_s3 + $0x120] sm:$0xff]  ;;  %v4686_v27 = vld [vmem:[%s5344_s3 + $0x130] sm:$0xff] }
 0x293   :  { %1563 = vmatprep.subr.mxu0 %v5524_v28  ;;  %1634 = vmatprep.subr.mxu1 %v5525_v29  ;;  %v4693_v28 = vld [vmem:[%s5344_s3 + $0x108] sm:$0xff]  ;;  %v4698_v29 = vld [vmem:[%s5344_s3 + $0x118] sm:$0xff] }
 0x294   :  { %1564 = vmatpush1.msra.mxu0 %v5526_v30  ;;  %1597 = vmatprep.mubr.f32.mxu0 %v5527_v31  ;;  %v4705_v30 = vld [vmem:[%s5344_s3 + $0x100] sm:$0xff] }
 0x295   :  { %1635 = vmatpush1.msra.mxu1 %v5528_v32  ;;  %1668 = vmatprep.mubr.f32.mxu1 %v5527_v31  ;;  %v4710_v32 = vld [vmem:[%s5344_s3 + $0x110] sm:$0xff] }
 0x296   :  { %1827 = vmatprep.subr.mxu0 %v4529_v54  ;;  %1898 = vmatprep.subr.mxu1 %v4534_v57 }
 0x335   :  { %v1305_v33 = vpop.f32.mrf.mxu0  ;;  %v1376_v34 = vpop.f32.mrf.mxu1 }
 0x337   :  { %v1307_v35 = vpop.f32.mrf.mxu0  ;;  %v1378_v36 = vpop.f32.mrf.mxu1 }
 0x338   :  { %v1385_v37 = vcombine.low %v1305_v33, %v1307_v35  ;;  %v1386_v38 = vcombine.low %v1376_v34, %v1378_v36  ;;  %v4717_v33 = vld [vmem:[%s5344_s3 + $0xe8] sm:$0xff]  ;;  %v4722_v34 = vld [vmem:[%s5344_s3 + $0xf8] sm:$0xff]  ;;  %v4729_v35 = vld [vmem:[%s5344_s3 + $0xe0] sm:$0xff] }
 0x339   :  { %v4734_v36 = vld [vmem:[%s5344_s3 + $0xf0] sm:$0xff] }
 0x33a   :  { %v1393_v39 = vrot.slane %v1385_v37, %v4352_v50  ;;  %v1400_v40 = vrot.slane %v1386_v38, %v4352_v50  ;;  %v4741_v37 = vld [vmem:[%s5344_s3 + $0xc8] sm:$0xff]  ;;  %v4746_v38 = vld [vmem:[%s5344_s3 + $0xd8] sm:$0xff] }
 0x33c   :  { %v1401_v41 = vcombine.low %v1393_v39, %v1400_v40  ;;  %v4753_v39 = vld [vmem:[%s5344_s3 + $0xc0] sm:$0xff]  ;;  %v4758_v40 = vld [vmem:[%s5344_s3 + $0xd0] sm:$0xff] }
 0x33e   :  { %v1408_v42 = vrot.slane %v1401_v41, %v4352_v50  ;;  %v4765_v41 = vld [vmem:[%s5344_s3 + $0xa8] sm:$0xff] }
 0x340   :  { %v1410_v44 = vadd.f32 %v1408_v42, %v1174_v43  ;;  %v4770_v42 = vld [vmem:[%s5344_s3 + $0xb8] sm:$0xff]  ;;  %v4777_v43 = vld [vmem:[%s5344_s3 + $0xa0] sm:$0xff] }
 0x341   :  { %5531 = vst [vmem:[#allocation7_spill] sm:$0xff] %v4777_v43 }
 0x342   :  { %v1411_v45 = vmul.f32 %v1410_v44, %v4360_v5  ;;  %v4782_v44 = vld [vmem:[%s5344_s3 + $0xb0] sm:$0xff] }
 0x343   :  { %5532 = vst [vmem:[#allocation9_spill] sm:$0xff] %v4782_v44 }
 0x344   :  { %3218 = vtanh.f32 %v1411_v45  ;;  %v4789_v45 = vld [vmem:[%s5344_s3 + $0x88] sm:$0xff] }
 0x345   :  { %5533 = vst [vmem:[#allocation10_spill] sm:$0xff] %v4789_v45 }
 0x351   :  { %v3219_v46 = vpop.eup %3218 }
 0x352   :  { %v1413_v47 = vadd.f32 1.0, %v3219_v46  ;;  %v1427_v55 = vrot.slane %v3219_v46, %v4346_v60  ;;  %v4794_v46 = vld [vmem:[%s5344_s3 + $0x98] sm:$0xff] }
 0x353   :  { %5534 = vst [vmem:[#allocation11_spill] sm:$0xff] %v4794_v46 }
 0x354   :  { %v1414_v48 = vmul.f32 0.5, %v1413_v47  ;;  %v4801_v47 = vld [vmem:[%s5344_s3 + $0x80] sm:$0xff] }
 0x355   :  { %5535 = vst [vmem:[#allocation12_spill] sm:$0xff] %v4801_v47 }
 0x356   :  { %v1440_v7 = vrot.slane %v1414_v48, %v4337_v53  ;;  %v1444_v3 = vrot.slane %v1414_v48, %v4342_v8  ;;  %v1452_v58 = vrot.slane %v1414_v48, %v4348_v59  ;;  %v4806_v48 = vld [vmem:[%s5344_s3 + $0x90] sm:$0xff] }
 0x357   :  { %5536 = vst [vmem:[#allocation13_spill] sm:$0xff] %v4806_v48 }
 0x358   :  { %v1461_v11 = vmul.f32 %v1444_v3, %v4444_v49  ;;  %v1462_v9 = vmul.f32 %v1440_v7, %v1427_v55  ;;  %v4563_v49 = vld [vmem:[%s5344_s3 + $0x1c0] sm:$0xff]  ;;  %v4813_v55 = vld [vmem:[%s5344_s3 + $0x68] sm:$0xff]  ;;  %v4818_v7 = vld [vmem:[%s5344_s3 + $0x78] sm:$0xff] }
 0x359   :  { %5537 = vst [vmem:[#allocation14_spill] sm:$0xff] %v4813_v55  ;;  %5538 = vst [vmem:[#allocation15_spill] sm:$0xff] %v4818_v7  ;;  %v4825_v3 = vld [vmem:[%s5344_s3 + $0x60] sm:$0xff] }
 0x35a   :  { %v4520_v56 = vadd.f32 %v1462_v9, %v1461_v11  ;;  %5539 = vst [vmem:[#allocation16_spill] sm:$0xff] %v4825_v3  ;;  %v4830_v11 = vld [vmem:[%s5344_s3 + $0x70] sm:$0xff]  ;;  %v4837_v9 = vld [vmem:[%s5344_s3 + $0x48] sm:$0xff] }
 0x35b   :  { %5540 = vst [vmem:[#allocation17_spill] sm:$0xff] %v4830_v11  ;;  %5541 = vst [vmem:[#allocation18_spill] sm:$0xff] %v4837_v9 }
 0x35c   :  { %3220 = vtanh.f32 %v4520_v56 }
 0x369   :  { %v3221_v63 = vpop.eup %3220 }
 0x36a   :  { %v1465_v10 = vmul.f32 %v3221_v63, %v1452_v58  ;;  %v4842_v58 = vld [vmem:[%s5344_s3 + $0x58] sm:$0xff]  ;;  %v4849_v63 = vld [vmem:[%s5344_s3 + $0x40] sm:$0xff] }
 0x36b   :  { %5542 = vst [vmem:[#allocation19_spill] sm:$0xff] %v4842_v58  ;;  %5543 = vst [vmem:[#allocation20_spill] sm:$0xff] %v4849_v63 }
 0x36c   :  { %1466 = vst [vmem:[#allocation5 + $0x2] sm:$0x1] %v1465_v10  ;;  %1598 = vmatmul.mubr.f32.vlgmr.msra.gmra.mxu0 %v1465_v10  ;;  %1669 = vmatmul.mubr.f32.vlgmr.msra.gmra.mxu1 %v1465_v10  ;;  %v4854_v10 = vld [vmem:[%s5344_s3 + $0x50] sm:$0xff] }
 0x36d   :  { %1891 = vmatprep.mubr.f32.mxu0 %v5527_v31  ;;  %1962 = vmatprep.mubr.f32.mxu1 %v5527_v31  ;;  %5544 = vst [vmem:[#allocation21_spill] sm:$0xff] %v4854_v10  ;;  %v4861_v31 = vld [vmem:[%s5344_s3 + $0x28] sm:$0xff] }
 0x36e   :  { %1828 = vmatpush1.msra.mxu0 %v4539_v52  ;;  %1899 = vmatpush1.msra.mxu1 %v4546_v0  ;;  %5545 = vst [vmem:[#allocation22_spill] sm:$0xff] %v4861_v31 }
 0x36f   :  { %1829 = vmatprep.subr.mxu0 %v4551_v51  ;;  %1900 = vmatprep.subr.mxu1 %v4556_v1 }
 0x370   :  { %1830 = vmatpush1.msra.mxu0 %v4563_v49  ;;  %1901 = vmatpush1.msra.mxu1 %v4568_v61 }
 0x371   :  { %1831 = vmatprep.subr.mxu0 %v4573_v12  ;;  %1902 = vmatprep.subr.mxu1 %v4580_v62 }
 0x372   :  { %1832 = vmatpush1.msra.mxu0 %v4585_v13  ;;  %1903 = vmatpush1.msra.mxu1 %v4590_v14 }
 0x373   :  { %1833 = vmatprep.subr.mxu0 %v4597_v4  ;;  %1904 = vmatprep.subr.mxu1 %v4602_v15 }
 0x374   :  { %1834 = vmatpush1.msra.mxu0 %v4609_v6  ;;  %1905 = vmatpush1.msra.mxu1 %v4614_v2 }
 0x375   :  { %1835 = vmatprep.subr.mxu0 %v4621_v16  ;;  %1906 = vmatprep.subr.mxu1 %v4626_v17 }
 0x376   :  { %1836 = vmatpush1.msra.mxu0 %v4633_v18  ;;  %1907 = vmatpush1.msra.mxu1 %v4638_v19 }
 0x377   :  { %1837 = vmatprep.subr.mxu0 %v4645_v20  ;;  %1908 = vmatprep.subr.mxu1 %v4650_v21 }
 0x378   :  { %1838 = vmatpush1.msra.mxu0 %v4657_v22  ;;  %1909 = vmatpush1.msra.mxu1 %v4662_v23 }
 0x379   :  { %1839 = vmatprep.subr.mxu0 %v4669_v24  ;;  %1910 = vmatprep.subr.mxu1 %v4674_v25 }
 0x37a   :  { %1840 = vmatpush1.msra.mxu0 %v4681_v26  ;;  %1911 = vmatpush1.msra.mxu1 %v4686_v27 }
 0x37b   :  { %1841 = vmatprep.subr.mxu0 %v4693_v28  ;;  %1912 = vmatprep.subr.mxu1 %v4698_v29 }
 0x37c   :  { %1842 = vmatpush1.msra.mxu0 %v4705_v30  ;;  %1913 = vmatpush1.msra.mxu1 %v4710_v32 }
 0x37d   :  { %1843 = vmatprep.subr.mxu0 %v4717_v33  ;;  %1914 = vmatprep.subr.mxu1 %v4722_v34 }
 0x37e   :  { %1844 = vmatpush1.msra.mxu0 %v4729_v35  ;;  %1915 = vmatpush1.msra.mxu1 %v4734_v36 }
 0x37f   :  { %1845 = vmatprep.subr.mxu0 %v4741_v37  ;;  %1916 = vmatprep.subr.mxu1 %v4746_v38 }
 0x380   :  { %1846 = vmatpush1.msra.mxu0 %v4753_v39  ;;  %1917 = vmatpush1.msra.mxu1 %v4758_v40 }
 0x381   :  { %1847 = vmatprep.subr.mxu0 %v4765_v41  ;;  %1918 = vmatprep.subr.mxu1 %v4770_v42 }
 0x382   :  { %1848 = vmatpush1.msra.mxu0 %v4777_v43  ;;  %1919 = vmatpush1.msra.mxu1 %v4782_v44 }
 0x383   :  { %1849 = vmatprep.subr.mxu0 %v4789_v45  ;;  %1920 = vmatprep.subr.mxu1 %v4794_v46 }
 0x384   :  { %1850 = vmatpush1.msra.mxu0 %v4801_v47  ;;  %1921 = vmatpush1.msra.mxu1 %v4806_v48 }
 0x385   :  { %1851 = vmatprep.subr.mxu0 %v4813_v55  ;;  %1922 = vmatprep.subr.mxu1 %v4818_v7  ;;  %v4866_v7 = vld [vmem:[%s5344_s3 + $0x38] sm:$0xff] }
 0x386   :  { %1852 = vmatpush1.msra.mxu0 %v4825_v3  ;;  %1923 = vmatpush1.msra.mxu1 %v4830_v11  ;;  %5546 = vst [vmem:[#allocation23_spill] sm:$0xff] %v4866_v7  ;;  %v4873_v3 = vld [vmem:[%s5344_s3 + $0x20] sm:$0xff]  ;;  %v4878_v11 = vld [vmem:[%s5344_s3 + $0x30] sm:$0xff] }
 0x387   :  { %1853 = vmatprep.subr.mxu0 %v4837_v9  ;;  %1924 = vmatprep.subr.mxu1 %v4842_v58  ;;  %5547 = vst [vmem:[#allocation24_spill] sm:$0xff] %v4873_v3  ;;  %5548 = vst [vmem:[#allocation25_spill] sm:$0xff] %v4878_v11  ;;  %v4885_v9 = vld [vmem:[%s5344_s3 + $0x8] sm:$0xff]  ;;  %v4890_v58 = vld [vmem:[%s5344_s3 + $0x18] sm:$0xff] }
 0x388   :  { %1854 = vmatpush1.msra.mxu0 %v4849_v63  ;;  %1925 = vmatpush1.msra.mxu1 %v4854_v10  ;;  %5549 = vst [vmem:[#allocation26_spill] sm:$0xff] %v4885_v9  ;;  %5550 = vst [vmem:[#allocation27_spill] sm:$0xff] %v4890_v58  ;;  %v4897_v63 = vld [vmem:[%s5344_s3] sm:$0xff]  ;;  %v4902_v10 = vld [vmem:[%s5344_s3 + $0x10] sm:$0xff] }
 0x389   :  { %1855 = vmatprep.subr.mxu0 %v4861_v31  ;;  %1926 = vmatprep.subr.mxu1 %v4866_v7  ;;  %5551 = vst [vmem:[#allocation28_spill] sm:$0xff] %v4897_v63  ;;  %5552 = vst [vmem:[#allocation29_spill] sm:$0xff] %v4902_v10 }
 0x38a   :  { %1856 = vmatpush1.msra.mxu0 %v4873_v3  ;;  %1927 = vmatpush1.msra.mxu1 %v4878_v11 }
 0x38b   :  { %1857 = vmatprep.subr.mxu0 %v4885_v9  ;;  %1928 = vmatprep.subr.mxu1 %v4890_v58 }
 0x38c   :  { %1858 = vmatpush1.msra.mxu0 %v4897_v63  ;;  %1929 = vmatpush1.msra.mxu1 %v4902_v10  ;;  %v1468_v63 = vld [vmem:[#allocation4 + $0x3] ss:$8 sm:$0xf] }
 0x38d   :  { %2121 = vmatprep.subr.mxu0 %v4529_v54  ;;  %2192 = vmatprep.subr.mxu1 %v4534_v57 }
 0x42c   :  { %v1599_v7 = vpop.f32.mrf.mxu0  ;;  %v1670_v31 = vpop.f32.mrf.mxu1 }
 0x42e   :  { %v1601_v55 = vpop.f32.mrf.mxu0  ;;  %v1672_v48 = vpop.f32.mrf.mxu1 }
 0x42f   :  { %v1679_v47 = vcombine.low %v1599_v7, %v1601_v55  ;;  %v1680_v3 = vcombine.low %v1670_v31, %v1672_v48 }
 0x431   :  { %v1687_v11 = vrot.slane %v1679_v47, %v4352_v50  ;;  %v1694_v9 = vrot.slane %v1680_v3, %v4352_v50 }
 0x433   :  { %v1695_v46 = vcombine.low %v1687_v11, %v1694_v9  ;;  %v5558_v11 = vld [vmem:[#allocation13_spill] sm:$0xff]  ;;  %v5559_v9 = vld [vmem:[#allocation14_spill] sm:$0xff] }
 0x435   :  { %v1702_v58 = vrot.slane %v1695_v46, %v4352_v50 }
 0x437   :  { %v1704_v45 = vadd.f32 %v1702_v58, %v1468_v63  ;;  %v5560_v58 = vld [vmem:[#allocation15_spill] sm:$0xff]  ;;  %v5561_v63 = vld [vmem:[#allocation16_spill] sm:$0xff] }
 0x439   :  { %v1705_v10 = vmul.f32 %v1704_v45, %v4360_v5 }
 0x43b   :  { %3222 = vtanh.f32 %v1705_v10  ;;  %v5562_v10 = vld [vmem:[#allocation17_spill] sm:$0xff] }
 0x448   :  { %v3223_v54 = vpop.eup %3222 }
 0x449   :  { %v1707_v57 = vadd.f32 1.0, %v3223_v54  ;;  %v1721_v43 = vrot.slane %v3223_v54, %v4346_v60  ;;  %v5554_v54 = vld [vmem:[#allocation9_spill] sm:$0xff] }
 0x44b   :  { %v1708_v44 = vmul.f32 0.5, %v1707_v57  ;;  %v5555_v57 = vld [vmem:[#allocation10_spill] sm:$0xff] }
 0x44d   :  { %v1734_v55 = vrot.slane %v1708_v44, %v4337_v53  ;;  %v1738_v31 = vrot.slane %v1708_v44, %v4342_v8  ;;  %v1746_v46 = vrot.slane %v1708_v44, %v4348_v59  ;;  %v5557_v44 = vld [vmem:[#allocation12_spill] sm:$0xff] }
 0x44f   :  { %v1755_v47 = vmul.f32 %v1738_v31, %v4520_v56  ;;  %v1756_v48 = vmul.f32 %v1734_v55, %v1721_v43  ;;  %v5553_v56 = vld [vmem:[#allocation7_spill] sm:$0xff]  ;;  %v5563_v55 = vld [vmem:[#allocation18_spill] sm:$0xff] }
 0x450   :  { %v5556_v43 = vld [vmem:[#allocation11_spill] sm:$0xff] }
 0x451   :  { %v4920_v7 = vadd.f32 %v1756_v48, %v1755_v47  ;;  %v5564_v31 = vld [vmem:[#allocation19_spill] sm:$0xff]  ;;  %v5565_v47 = vld [vmem:[#allocation20_spill] sm:$0xff]  ;;  %v5566_v48 = vld [vmem:[#allocation21_spill] sm:$0xff] }
 0x453   :  { %3224 = vtanh.f32 %v4920_v7 }
 0x460   :  { %v3225_v45 = vpop.eup %3224 }
 0x461   :  { %v1759_v3 = vmul.f32 %v3225_v45, %v1746_v46  ;;  %v5567_v46 = vld [vmem:[#allocation22_spill] sm:$0xff]  ;;  %v5568_v45 = vld [vmem:[#allocation23_spill] sm:$0xff] }
 0x463   :  { %1760 = vst [vmem:[#allocation5 + $0x3] sm:$0x1] %v1759_v3  ;;  %1892 = vmatmul.mubr.f32.vlgmr.msra.gmra.mxu0 %v1759_v3  ;;  %1963 = vmatmul.mubr.f32.vlgmr.msra.gmra.mxu1 %v1759_v3  ;;  %v5569_v3 = vld [vmem:[#allocation24_spill] sm:$0xff] }
 0x464   :  { %2122 = vmatpush1.msra.mxu0 %v4539_v52  ;;  %2193 = vmatpush1.msra.mxu1 %v4546_v0 }
 0x465   :  { %2123 = vmatprep.subr.mxu0 %v4551_v51  ;;  %2194 = vmatprep.subr.mxu1 %v4556_v1 }
 0x466   :  { %2124 = vmatpush1.msra.mxu0 %v4563_v49  ;;  %2195 = vmatpush1.msra.mxu1 %v4568_v61 }
 0x467   :  { %2125 = vmatprep.subr.mxu0 %v4573_v12  ;;  %2196 = vmatprep.subr.mxu1 %v4580_v62 }
 0x468   :  { %2126 = vmatpush1.msra.mxu0 %v4585_v13  ;;  %2197 = vmatpush1.msra.mxu1 %v4590_v14 }
 0x469   :  { %2127 = vmatprep.subr.mxu0 %v4597_v4  ;;  %2198 = vmatprep.subr.mxu1 %v4602_v15 }
 0x46a   :  { %2128 = vmatpush1.msra.mxu0 %v4609_v6  ;;  %2199 = vmatpush1.msra.mxu1 %v4614_v2 }
 0x46b   :  { %2129 = vmatprep.subr.mxu0 %v4621_v16  ;;  %2200 = vmatprep.subr.mxu1 %v4626_v17 }
 0x46c   :  { %2130 = vmatpush1.msra.mxu0 %v4633_v18  ;;  %2201 = vmatpush1.msra.mxu1 %v4638_v19 }
 0x46d   :  { %2131 = vmatprep.subr.mxu0 %v4645_v20  ;;  %2202 = vmatprep.subr.mxu1 %v4650_v21 }
 0x46e   :  { %2132 = vmatpush1.msra.mxu0 %v4657_v22  ;;  %2203 = vmatpush1.msra.mxu1 %v4662_v23 }
 0x46f   :  { %2133 = vmatprep.subr.mxu0 %v4669_v24  ;;  %2204 = vmatprep.subr.mxu1 %v4674_v25 }
 0x470   :  { %2134 = vmatpush1.msra.mxu0 %v4681_v26  ;;  %2205 = vmatpush1.msra.mxu1 %v4686_v27 }
 0x471   :  { %2135 = vmatprep.subr.mxu0 %v4693_v28  ;;  %2206 = vmatprep.subr.mxu1 %v4698_v29 }
 0x472   :  { %2136 = vmatpush1.msra.mxu0 %v4705_v30  ;;  %2207 = vmatpush1.msra.mxu1 %v4710_v32 }
 0x473   :  { %2137 = vmatprep.subr.mxu0 %v4717_v33  ;;  %2208 = vmatprep.subr.mxu1 %v4722_v34 }
 0x474   :  { %2138 = vmatpush1.msra.mxu0 %v4729_v35  ;;  %2209 = vmatpush1.msra.mxu1 %v4734_v36 }
 0x475   :  { %2139 = vmatprep.subr.mxu0 %v4741_v37  ;;  %2210 = vmatprep.subr.mxu1 %v4746_v38 }
 0x476   :  { %2140 = vmatpush1.msra.mxu0 %v4753_v39  ;;  %2211 = vmatpush1.msra.mxu1 %v4758_v40 }
 0x477   :  { %2141 = vmatprep.subr.mxu0 %v4765_v41  ;;  %2212 = vmatprep.subr.mxu1 %v4770_v42 }
 0x478   :  { %2142 = vmatpush1.msra.mxu0 %v5553_v56  ;;  %2213 = vmatpush1.msra.mxu1 %v5554_v54 }
 0x479   :  { %2143 = vmatprep.subr.mxu0 %v5555_v57  ;;  %2214 = vmatprep.subr.mxu1 %v5556_v43 }
 0x47a   :  { %2144 = vmatpush1.msra.mxu0 %v5557_v44  ;;  %2215 = vmatpush1.msra.mxu1 %v5558_v11 }
 0x47b   :  { %2145 = vmatprep.subr.mxu0 %v5559_v9  ;;  %2216 = vmatprep.subr.mxu1 %v5560_v58  ;;  %v5570_v9 = vld [vmem:[#allocation25_spill] sm:$0xff]  ;;  %v5571_v58 = vld [vmem:[#allocation26_spill] sm:$0xff] }
 0x47c   :  { %2146 = vmatpush1.msra.mxu0 %v5561_v63  ;;  %2217 = vmatpush1.msra.mxu1 %v5562_v10  ;;  %v5572_v63 = vld [vmem:[#allocation27_spill] sm:$0xff]  ;;  %v5573_v10 = vld [vmem:[#allocation28_spill] sm:$0xff] }
 0x47d   :  { %2147 = vmatprep.subr.mxu0 %v5563_v55  ;;  %2218 = vmatprep.subr.mxu1 %v5564_v31  ;;  %v5574_v55 = vmov 0.0   ;;  %v5575_v31 = vld [vmem:[#allocation29_spill] sm:$0xff] }
 0x47e   :  { %2148 = vmatpush1.msra.mxu0 %v5565_v47  ;;  %2219 = vmatpush1.msra.mxu1 %v5566_v48  ;;  %v5576_v48 = vld [vmem:[#allocation8_spill] sm:$0xff] }
 0x47f   :  { %2149 = vmatprep.subr.mxu0 %v5567_v46  ;;  %2220 = vmatprep.subr.mxu1 %v5568_v45  ;;  %v5577_v46 = vld [vmem:[#allocation6_spill] sm:$0xff] }
 0x480   :  { %2150 = vmatpush1.msra.mxu0 %v5569_v3  ;;  %2221 = vmatpush1.msra.mxu1 %v5570_v9 }
 0x481   :  { %2151 = vmatprep.subr.mxu0 %v5571_v58  ;;  %2222 = vmatprep.subr.mxu1 %v5572_v63 }
 0x482   :  { %2152 = vmatpush1.msra.mxu0 %v5573_v10  ;;  %2185 = vmatprep.mubr.f32.mxu0 %v5574_v55 }
 0x483   :  { %2223 = vmatpush1.msra.mxu1 %v5575_v31  ;;  %2256 = vmatprep.mubr.f32.mxu1 %v5574_v55  ;;  %v1762_v31 = vld [vmem:[#allocation4 + $0x4] ss:$8 sm:$0xf] }
 0x484   :  { %2415 = vmatprep.subr.mxu0 %v5576_v48  ;;  %2486 = vmatprep.subr.mxu1 %v5577_v46 }
 0x523   :  { %v1893_v45 = vpop.f32.mrf.mxu0  ;;  %v1964_v3 = vpop.f32.mrf.mxu1 }
 0x525   :  { %v1895_v47 = vpop.f32.mrf.mxu0  ;;  %v1966_v9 = vpop.f32.mrf.mxu1 }
 0x526   :  { %v1973_v11 = vcombine.low %v1893_v45, %v1895_v47  ;;  %v1974_v58 = vcombine.low %v1964_v3, %v1966_v9  ;;  %v5586_v45 = vld [vmem:[#allocation16_spill] sm:$0xff]  ;;  %v5587_v3 = vld [vmem:[#allocation17_spill] sm:$0xff] }
 0x528   :  { %v1981_v63 = vrot.slane %v1973_v11, %v4352_v50  ;;  %v1988_v10 = vrot.slane %v1974_v58, %v4352_v50 }
 0x52a   :  { %v1989_v44 = vcombine.low %v1981_v63, %v1988_v10  ;;  %v5581_v10 = vld [vmem:[#allocation11_spill] sm:$0xff] }
 0x52c   :  { %v1996_v43 = vrot.slane %v1989_v44, %v4352_v50 }
 0x52e   :  { %v1998_v57 = vadd.f32 %v1996_v43, %v1762_v31  ;;  %v5583_v31 = vld [vmem:[#allocation13_spill] sm:$0xff] }
 0x530   :  { %v1999_v55 = vmul.f32 %v1998_v57, %v4360_v5 }
 0x532   :  { %3226 = vtanh.f32 %v1999_v55  ;;  %v5582_v55 = vld [vmem:[#allocation12_spill] sm:$0xff] }
 0x53f   :  { %v3227_v48 = vpop.eup %3226 }
 0x540   :  { %v2001_v46 = vadd.f32 1.0, %v3227_v48  ;;  %v2015_v56 = vrot.slane %v3227_v48, %v4346_v60  ;;  %v5584_v48 = vld [vmem:[#allocation14_spill] sm:$0xff] }
 0x542   :  { %v2002_v54 = vmul.f32 0.5, %v2001_v46  ;;  %v5585_v46 = vld [vmem:[#allocation15_spill] sm:$0xff] }
 0x544   :  { %v2028_v47 = vrot.slane %v2002_v54, %v4337_v53  ;;  %v2032_v9 = vrot.slane %v2002_v54, %v4342_v8  ;;  %v2040_v43 = vrot.slane %v2002_v54, %v4348_v59  ;;  %v5580_v54 = vld [vmem:[#allocation10_spill] sm:$0xff] }
 0x546   :  { %v2049_v11 = vmul.f32 %v2032_v9, %v4920_v7  ;;  %v2050_v58 = vmul.f32 %v2028_v47, %v2015_v56  ;;  %v5578_v7 = vld [vmem:[#allocation7_spill] sm:$0xff]  ;;  %v5579_v56 = vld [vmem:[#allocation9_spill] sm:$0xff]  ;;  %v5588_v47 = vld [vmem:[#allocation18_spill] sm:$0xff] }
 0x547   :  { %v5589_v9 = vld [vmem:[#allocation19_spill] sm:$0xff] }
 0x548   :  { %v4998_v63 = vadd.f32 %v2050_v58, %v2049_v11  ;;  %v5590_v11 = vld [vmem:[#allocation20_spill] sm:$0xff]  ;;  %v5591_v58 = vld [vmem:[#allocation21_spill] sm:$0xff] }
 0x54a   :  { %3228 = vtanh.f32 %v4998_v63 }
 0x557   :  { %v3229_v57 = vpop.eup %3228 }
 0x558   :  { %v2053_v44 = vmul.f32 %v3229_v57, %v2040_v43  ;;  %v5592_v43 = vld [vmem:[#allocation22_spill] sm:$0xff]  ;;  %v5593_v57 = vld [vmem:[#allocation23_spill] sm:$0xff] }
 0x55a   :  { %2054 = vst [vmem:[#allocation5 + $0x4] sm:$0x1] %v2053_v44  ;;  %2186 = vmatmul.mubr.f32.vlgmr.msra.gmra.mxu0 %v2053_v44  ;;  %2257 = vmatmul.mubr.f32.vlgmr.msra.gmra.mxu1 %v2053_v44  ;;  %v5594_v44 = vld [vmem:[#allocation24_spill] sm:$0xff] }
 0x55b   :  { %2416 = vmatpush1.msra.mxu0 %v4539_v52  ;;  %2487 = vmatpush1.msra.mxu1 %v4546_v0 }
 0x55c   :  { %2417 = vmatprep.subr.mxu0 %v4551_v51  ;;  %2488 = vmatprep.subr.mxu1 %v4556_v1 }
 0x55d   :  { %2418 = vmatpush1.msra.mxu0 %v4563_v49  ;;  %2489 = vmatpush1.msra.mxu1 %v4568_v61 }
 0x55e   :  { %2419 = vmatprep.subr.mxu0 %v4573_v12  ;;  %2490 = vmatprep.subr.mxu1 %v4580_v62 }
 0x55f   :  { %2420 = vmatpush1.msra.mxu0 %v4585_v13  ;;  %2491 = vmatpush1.msra.mxu1 %v4590_v14 }
 0x560   :  { %2421 = vmatprep.subr.mxu0 %v4597_v4  ;;  %2492 = vmatprep.subr.mxu1 %v4602_v15 }
 0x561   :  { %2422 = vmatpush1.msra.mxu0 %v4609_v6  ;;  %2493 = vmatpush1.msra.mxu1 %v4614_v2 }
 0x562   :  { %2423 = vmatprep.subr.mxu0 %v4621_v16  ;;  %2494 = vmatprep.subr.mxu1 %v4626_v17 }
 0x563   :  { %2424 = vmatpush1.msra.mxu0 %v4633_v18  ;;  %2495 = vmatpush1.msra.mxu1 %v4638_v19 }
 0x564   :  { %2425 = vmatprep.subr.mxu0 %v4645_v20  ;;  %2496 = vmatprep.subr.mxu1 %v4650_v21 }
 0x565   :  { %2426 = vmatpush1.msra.mxu0 %v4657_v22  ;;  %2497 = vmatpush1.msra.mxu1 %v4662_v23 }
 0x566   :  { %2427 = vmatprep.subr.mxu0 %v4669_v24  ;;  %2498 = vmatprep.subr.mxu1 %v4674_v25 }
 0x567   :  { %2428 = vmatpush1.msra.mxu0 %v4681_v26  ;;  %2499 = vmatpush1.msra.mxu1 %v4686_v27 }
 0x568   :  { %2429 = vmatprep.subr.mxu0 %v4693_v28  ;;  %2500 = vmatprep.subr.mxu1 %v4698_v29 }
 0x569   :  { %2430 = vmatpush1.msra.mxu0 %v4705_v30  ;;  %2501 = vmatpush1.msra.mxu1 %v4710_v32 }
 0x56a   :  { %2431 = vmatprep.subr.mxu0 %v4717_v33  ;;  %2502 = vmatprep.subr.mxu1 %v4722_v34 }
 0x56b   :  { %2432 = vmatpush1.msra.mxu0 %v4729_v35  ;;  %2503 = vmatpush1.msra.mxu1 %v4734_v36 }
 0x56c   :  { %2433 = vmatprep.subr.mxu0 %v4741_v37  ;;  %2504 = vmatprep.subr.mxu1 %v4746_v38 }
 0x56d   :  { %2434 = vmatpush1.msra.mxu0 %v4753_v39  ;;  %2505 = vmatpush1.msra.mxu1 %v4758_v40 }
 0x56e   :  { %2435 = vmatprep.subr.mxu0 %v4765_v41  ;;  %2506 = vmatprep.subr.mxu1 %v4770_v42 }
 0x56f   :  { %2436 = vmatpush1.msra.mxu0 %v5578_v7  ;;  %2507 = vmatpush1.msra.mxu1 %v5579_v56 }
 0x570   :  { %2437 = vmatprep.subr.mxu0 %v5580_v54  ;;  %2508 = vmatprep.subr.mxu1 %v5581_v10 }
 0x571   :  { %2438 = vmatpush1.msra.mxu0 %v5582_v55  ;;  %2509 = vmatpush1.msra.mxu1 %v5583_v31 }
 0x572   :  { %2439 = vmatprep.subr.mxu0 %v5584_v48  ;;  %2510 = vmatprep.subr.mxu1 %v5585_v46  ;;  %v5595_v48 = vld [vmem:[#allocation25_spill] sm:$0xff]  ;;  %v5596_v46 = vld [vmem:[#allocation26_spill] sm:$0xff] }
 0x573   :  { %2440 = vmatpush1.msra.mxu0 %v5586_v45  ;;  %2511 = vmatpush1.msra.mxu1 %v5587_v3  ;;  %v5597_v45 = vld [vmem:[#allocation27_spill] sm:$0xff]  ;;  %v5598_v3 = vld [vmem:[#allocation28_spill] sm:$0xff] }
 0x574   :  { %2441 = vmatprep.subr.mxu0 %v5588_v47  ;;  %2512 = vmatprep.subr.mxu1 %v5589_v9  ;;  %v5599_v47 = vmov 0.0   ;;  %v5600_v9 = vld [vmem:[#allocation29_spill] sm:$0xff] }
 0x575   :  { %2442 = vmatpush1.msra.mxu0 %v5590_v11  ;;  %2513 = vmatpush1.msra.mxu1 %v5591_v58  ;;  %v5601_v58 = vld [vmem:[#allocation8_spill] sm:$0xff] }
 0x576   :  { %2443 = vmatprep.subr.mxu0 %v5592_v43  ;;  %2514 = vmatprep.subr.mxu1 %v5593_v57  ;;  %v5602_v43 = vld [vmem:[#allocation6_spill] sm:$0xff] }
 0x577   :  { %2444 = vmatpush1.msra.mxu0 %v5594_v44  ;;  %2515 = vmatpush1.msra.mxu1 %v5595_v48 }
 0x578   :  { %2445 = vmatprep.subr.mxu0 %v5596_v46  ;;  %2516 = vmatprep.subr.mxu1 %v5597_v45 }
 0x579   :  { %2446 = vmatpush1.msra.mxu0 %v5598_v3  ;;  %2479 = vmatprep.mubr.f32.mxu0 %v5599_v47 }
 0x57a   :  { %2517 = vmatpush1.msra.mxu1 %v5600_v9  ;;  %2550 = vmatprep.mubr.f32.mxu1 %v5599_v47  ;;  %v2056_v9 = vld [vmem:[#allocation4 + $0x5] ss:$8 sm:$0xf] }
 0x57b   :  { %2709 = vmatprep.subr.mxu0 %v5601_v58  ;;  %2780 = vmatprep.subr.mxu1 %v5602_v43 }
 0x61a   :  { %v2187_v57 = vpop.f32.mrf.mxu0  ;;  %v2258_v44 = vpop.f32.mrf.mxu1 }
 0x61c   :  { %v2189_v11 = vpop.f32.mrf.mxu0  ;;  %v2260_v48 = vpop.f32.mrf.mxu1 }
 0x61d   :  { %v2267_v31 = vcombine.low %v2187_v57, %v2189_v11  ;;  %v2268_v46 = vcombine.low %v2258_v44, %v2260_v48 }
 0x61f   :  { %v2275_v45 = vrot.slane %v2267_v31, %v4352_v50  ;;  %v2282_v3 = vrot.slane %v2268_v46, %v4352_v50 }
 0x621   :  { %v2283_v55 = vcombine.low %v2275_v45, %v2282_v3 }
 0x623   :  { %v2290_v10 = vrot.slane %v2283_v55, %v4352_v50 }
 0x625   :  { %v2292_v54 = vadd.f32 %v2290_v10, %v2056_v9 }
 0x627   :  { %v2293_v47 = vmul.f32 %v2292_v54, %v4360_v5 }
 0x629   :  { %3230 = vtanh.f32 %v2293_v47 }
 0x636   :  { %v3231_v58 = vpop.eup %3230 }
 0x637   :  { %v2295_v43 = vadd.f32 1.0, %v3231_v58  ;;  %v2309_v7 = vrot.slane %v3231_v58, %v4346_v60  ;;  %v2986_v58 = vld [vmem:[%s5346_s4 + $0x170] sm:$0xff] }
 0x639   :  { %v2296_v56 = vmul.f32 0.5, %v2295_v43  ;;  %v2985_v43 = vld [vmem:[%s5346_s4 + $0x168] sm:$0xff] }
 0x63b   :  { %v2322_v11 = vrot.slane %v2296_v56, %v4337_v53  ;;  %v2326_v48 = vrot.slane %v2296_v56, %v4342_v8  ;;  %v2334_v10 = vrot.slane %v2296_v56, %v4348_v59 }
 0x63d   :  { %v2343_v31 = vmul.f32 %v2326_v48, %v4998_v63  ;;  %v2344_v46 = vmul.f32 %v2322_v11, %v2309_v7  ;;  %v2987_v11 = vld [vmem:[%s5346_s4 + $0x178] sm:$0xff] }
 0x63e   :  { %v2983_v48 = vld [vmem:[%s5346_s4 + $0x158] sm:$0xff] }
 0x63f   :  { %v5076_v45 = vadd.f32 %v2344_v46, %v2343_v31  ;;  %v2982_v31 = vld [vmem:[%s5346_s4 + $0x150] sm:$0xff]  ;;  %v2984_v46 = vld [vmem:[%s5346_s4 + $0x160] sm:$0xff] }
 0x641   :  { %3232 = vtanh.f32 %v5076_v45 }
 0x64e   :  { %v3233_v54 = vpop.eup %3232 }
 0x64f   :  { %v2347_v55 = vmul.f32 %v3233_v54, %v2334_v10  ;;  %v2979_v10 = vld [vmem:[%s5346_s4 + $0x138] sm:$0xff]  ;;  %v2981_v54 = vld [vmem:[%s5346_s4 + $0x148] sm:$0xff] }
 0x651   :  { %2348 = vst [vmem:[#allocation5 + $0x5] sm:$0x1] %v2347_v55  ;;  %2480 = vmatmul.mubr.f32.vlgmr.msra.gmra.mxu0 %v2347_v55  ;;  %2551 = vmatmul.mubr.f32.vlgmr.msra.gmra.mxu1 %v2347_v55  ;;  %v2977_v55 = vld [vmem:[%s5346_s4 + $0x128] sm:$0xff] }
 0x652   :  { %2710 = vmatpush1.msra.mxu0 %v4539_v52  ;;  %2781 = vmatpush1.msra.mxu1 %v4546_v0  ;;  %v5603_v52 = vld [vmem:[#allocation7_spill] sm:$0xff]  ;;  %v5604_v0 = vld [vmem:[#allocation9_spill] sm:$0xff] }
 0x653   :  { %2711 = vmatprep.subr.mxu0 %v4551_v51  ;;  %2782 = vmatprep.subr.mxu1 %v4556_v1  ;;  %v5605_v51 = vld [vmem:[#allocation10_spill] sm:$0xff]  ;;  %v5606_v1 = vld [vmem:[#allocation11_spill] sm:$0xff] }
 0x654   :  { %2712 = vmatpush1.msra.mxu0 %v4563_v49  ;;  %2783 = vmatpush1.msra.mxu1 %v4568_v61  ;;  %v5607_v49 = vld [vmem:[#allocation12_spill] sm:$0xff]  ;;  %v5608_v61 = vld [vmem:[#allocation13_spill] sm:$0xff] }
 0x655   :  { %2713 = vmatprep.subr.mxu0 %v4573_v12  ;;  %2784 = vmatprep.subr.mxu1 %v4580_v62  ;;  %v5609_v12 = vld [vmem:[#allocation14_spill] sm:$0xff]  ;;  %v5610_v62 = vld [vmem:[#allocation15_spill] sm:$0xff] }
 0x656   :  { %2714 = vmatpush1.msra.mxu0 %v4585_v13  ;;  %2785 = vmatpush1.msra.mxu1 %v4590_v14  ;;  %v5611_v13 = vld [vmem:[#allocation16_spill] sm:$0xff]  ;;  %v5612_v14 = vld [vmem:[#allocation17_spill] sm:$0xff] }
 0x657   :  { %2715 = vmatprep.subr.mxu0 %v4597_v4  ;;  %2786 = vmatprep.subr.mxu1 %v4602_v15  ;;  %v5613_v4 = vld [vmem:[#allocation18_spill] sm:$0xff]  ;;  %v5614_v15 = vld [vmem:[#allocation19_spill] sm:$0xff] }
 0x658   :  { %2716 = vmatpush1.msra.mxu0 %v4609_v6  ;;  %2787 = vmatpush1.msra.mxu1 %v4614_v2  ;;  %v5615_v6 = vld [vmem:[#allocation20_spill] sm:$0xff]  ;;  %v5616_v2 = vld [vmem:[#allocation21_spill] sm:$0xff] }
 0x659   :  { %2717 = vmatprep.subr.mxu0 %v4621_v16  ;;  %2788 = vmatprep.subr.mxu1 %v4626_v17  ;;  %v5617_v16 = vld [vmem:[#allocation22_spill] sm:$0xff]  ;;  %v5618_v17 = vld [vmem:[#allocation23_spill] sm:$0xff] }
 0x65a   :  { %2718 = vmatpush1.msra.mxu0 %v4633_v18  ;;  %2789 = vmatpush1.msra.mxu1 %v4638_v19  ;;  %v5619_v18 = vld [vmem:[#allocation24_spill] sm:$0xff]  ;;  %v5620_v19 = vld [vmem:[#allocation25_spill] sm:$0xff] }
 0x65b   :  { %2719 = vmatprep.subr.mxu0 %v4645_v20  ;;  %2790 = vmatprep.subr.mxu1 %v4650_v21  ;;  %v5621_v20 = vld [vmem:[#allocation26_spill] sm:$0xff]  ;;  %v5622_v21 = vld [vmem:[#allocation27_spill] sm:$0xff] }
 0x65c   :  { %2720 = vmatpush1.msra.mxu0 %v4657_v22  ;;  %2791 = vmatpush1.msra.mxu1 %v4662_v23  ;;  %v5623_v22 = vld [vmem:[#allocation28_spill] sm:$0xff]  ;;  %v5624_v23 = vmov 0.0  }
 0x65d   :  { %2721 = vmatprep.subr.mxu0 %v4669_v24  ;;  %2792 = vmatprep.subr.mxu1 %v4674_v25  ;;  %v5625_v24 = vld [vmem:[#allocation29_spill] sm:$0xff] }
 0x65e   :  { %2722 = vmatpush1.msra.mxu0 %v4681_v26  ;;  %2793 = vmatpush1.msra.mxu1 %v4686_v27 }
 0x65f   :  { %2723 = vmatprep.subr.mxu0 %v4693_v28  ;;  %2794 = vmatprep.subr.mxu1 %v4698_v29 }
 0x660   :  { %2724 = vmatpush1.msra.mxu0 %v4705_v30  ;;  %2795 = vmatpush1.msra.mxu1 %v4710_v32 }
 0x661   :  { %2725 = vmatprep.subr.mxu0 %v4717_v33  ;;  %2796 = vmatprep.subr.mxu1 %v4722_v34 }
 0x662   :  { %2726 = vmatpush1.msra.mxu0 %v4729_v35  ;;  %2797 = vmatpush1.msra.mxu1 %v4734_v36  ;;  %v2350_v36 = vld [vmem:[#allocation4 + $0x6] ss:$8 sm:$0xf] }
 0x663   :  { %2727 = vmatprep.subr.mxu0 %v4741_v37  ;;  %2798 = vmatprep.subr.mxu1 %v4746_v38 }
 0x664   :  { %2728 = vmatpush1.msra.mxu0 %v4753_v39  ;;  %2799 = vmatpush1.msra.mxu1 %v4758_v40 }
 0x665   :  { %2729 = vmatprep.subr.mxu0 %v4765_v41  ;;  %2800 = vmatprep.subr.mxu1 %v4770_v42 }
 0x666   :  { %2730 = vmatpush1.msra.mxu0 %v5603_v52  ;;  %2801 = vmatpush1.msra.mxu1 %v5604_v0  ;;  %v2976_v52 = vld [vmem:[%s5346_s4 + $0x120] sm:$0xff]  ;;  %v2978_v0 = vld [vmem:[%s5346_s4 + $0x130] sm:$0xff] }
 0x667   :  { %2731 = vmatprep.subr.mxu0 %v5605_v51  ;;  %2802 = vmatprep.subr.mxu1 %v5606_v1  ;;  %v2974_v51 = vld [vmem:[%s5346_s4 + $0x110] sm:$0xff]  ;;  %v2973_v1 = vld [vmem:[%s5346_s4 + $0x108] sm:$0xff] }
 0x668   :  { %2732 = vmatpush1.msra.mxu0 %v5607_v49  ;;  %2803 = vmatpush1.msra.mxu1 %v5608_v61  ;;  %v2975_v49 = vld [vmem:[%s5346_s4 + $0x118] sm:$0xff] }
 0x669   :  { %2733 = vmatprep.subr.mxu0 %v5609_v12  ;;  %2804 = vmatprep.subr.mxu1 %v5610_v62  ;;  %v2971_v61 = vld [vmem:[%s5346_s4 + $0xf8] sm:$0xff]  ;;  %v2970_v12 = vld [vmem:[%s5346_s4 + $0xf0] sm:$0xff]  ;;  %v2972_v62 = vld [vmem:[%s5346_s4 + $0x100] sm:$0xff] }
 0x66a   :  { %2734 = vmatpush1.msra.mxu0 %v5611_v13  ;;  %2805 = vmatpush1.msra.mxu1 %v5612_v14  ;;  %v2968_v13 = vld [vmem:[%s5346_s4 + $0xe0] sm:$0xff]  ;;  %v2967_v14 = vld [vmem:[%s5346_s4 + $0xd8] sm:$0xff] }
 0x66b   :  { %2735 = vmatprep.subr.mxu0 %v5613_v4  ;;  %2806 = vmatprep.subr.mxu1 %v5614_v15  ;;  %v2969_v4 = vld [vmem:[%s5346_s4 + $0xe8] sm:$0xff] }
 0x66c   :  { %2736 = vmatpush1.msra.mxu0 %v5615_v6  ;;  %2807 = vmatpush1.msra.mxu1 %v5616_v2  ;;  %v2965_v15 = vld [vmem:[%s5346_s4 + $0xc8] sm:$0xff]  ;;  %v2964_v6 = vld [vmem:[%s5346_s4 + $0xc0] sm:$0xff]  ;;  %v2966_v2 = vld [vmem:[%s5346_s4 + $0xd0] sm:$0xff] }
 0x66d   :  { %2737 = vmatprep.subr.mxu0 %v5617_v16  ;;  %2808 = vmatprep.subr.mxu1 %v5618_v17  ;;  %v2962_v16 = vld [vmem:[%s5346_s4 + $0xb0] sm:$0xff]  ;;  %v2961_v17 = vld [vmem:[%s5346_s4 + $0xa8] sm:$0xff] }
 0x66e   :  { %2738 = vmatpush1.msra.mxu0 %v5619_v18  ;;  %2809 = vmatpush1.msra.mxu1 %v5620_v19  ;;  %v2963_v18 = vld [vmem:[%s5346_s4 + $0xb8] sm:$0xff] }
 0x66f   :  { %2739 = vmatprep.subr.mxu0 %v5621_v20  ;;  %2810 = vmatprep.subr.mxu1 %v5622_v21  ;;  %v2959_v19 = vld [vmem:[%s5346_s4 + $0x98] sm:$0xff]  ;;  %v2958_v20 = vld [vmem:[%s5346_s4 + $0x90] sm:$0xff]  ;;  %v2960_v21 = vld [vmem:[%s5346_s4 + $0xa0] sm:$0xff] }
 0x670   :  { %2740 = vmatpush1.msra.mxu0 %v5623_v22  ;;  %2773 = vmatprep.mubr.f32.mxu0 %v5624_v23  ;;  %v2956_v22 = vld [vmem:[%s5346_s4 + $0x80] sm:$0xff] }
 0x671   :  { %2811 = vmatpush1.msra.mxu1 %v5625_v24  ;;  %2844 = vmatprep.mubr.f32.mxu1 %v5624_v23  ;;  %v2955_v24 = vld [vmem:[%s5346_s4 + $0x78] sm:$0xff] }
 0x672   :  { %3170 = vmatprep.subr.mxu1 %v5624_v23  ;;  %3005 = vmatprep.subr.mxu0 %v2986_v58 }
 0x711   :  { %v2481_v25 = vpop.f32.mrf.mxu0  ;;  %v2552_v26 = vpop.f32.mrf.mxu1 }
 0x713   :  { %v2483_v27 = vpop.f32.mrf.mxu0  ;;  %v2554_v28 = vpop.f32.mrf.mxu1 }
 0x714   :  { %v2561_v29 = vcombine.low %v2481_v25, %v2483_v27  ;;  %v2562_v30 = vcombine.low %v2552_v26, %v2554_v28  ;;  %v2957_v25 = vld [vmem:[%s5346_s4 + $0x88] sm:$0xff]  ;;  %v2952_v27 = vld [vmem:[%s5346_s4 + $0x60] sm:$0xff]  ;;  %v2954_v28 = vld [vmem:[%s5346_s4 + $0x70] sm:$0xff] }
 0x715   :  { %v2953_v26 = vld [vmem:[%s5346_s4 + $0x68] sm:$0xff] }
 0x716   :  { %v2569_v32 = vrot.slane %v2561_v29, %v4352_v50  ;;  %v2576_v33 = vrot.slane %v2562_v30, %v4352_v50  ;;  %v2950_v29 = vld [vmem:[%s5346_s4 + $0x50] sm:$0xff]  ;;  %v2949_v30 = vld [vmem:[%s5346_s4 + $0x48] sm:$0xff] }
 0x718   :  { %v2577_v34 = vcombine.low %v2569_v32, %v2576_v33  ;;  %v2951_v32 = vld [vmem:[%s5346_s4 + $0x58] sm:$0xff] }
 0x719   :  { %v2947_v33 = vld [vmem:[%s5346_s4 + $0x38] sm:$0xff] }
 0x71a   :  { %v2584_v35 = vrot.slane %v2577_v34, %v4352_v50  ;;  %v2946_v34 = vld [vmem:[%s5346_s4 + $0x30] sm:$0xff] }
 0x71c   :  { %v2586_v37 = vadd.f32 %v2584_v35, %v2350_v36  ;;  %v2948_v35 = vld [vmem:[%s5346_s4 + $0x40] sm:$0xff] }
 0x71d   :  { %v2944_v36 = vld [vmem:[%s5346_s4 + $0x20] sm:$0xff] }
 0x71e   :  { %v2587_v38 = vmul.f32 %v2586_v37, %v4360_v5  ;;  %v2943_v37 = vld [vmem:[%s5346_s4 + $0x18] sm:$0xff] }
 0x720   :  { %3234 = vtanh.f32 %v2587_v38  ;;  %v2945_v38 = vld [vmem:[%s5346_s4 + $0x28] sm:$0xff] }
 0x72d   :  { %v3235_v39 = vpop.eup %3234 }
 0x72e   :  { %v2589_v40 = vadd.f32 1.0, %v3235_v39  ;;  %v2603_v42 = vrot.slane %v3235_v39, %v4346_v60  ;;  %v2941_v39 = vld [vmem:[%s5346_s4 + $0x8] sm:$0xff] }
 0x730   :  { %v2590_v41 = vmul.f32 0.5, %v2589_v40  ;;  %v2940_v40 = vld [vmem:[%s5346_s4] sm:$0xff] }
 0x732   :  { %v2616_v63 = vrot.slane %v2590_v41, %v4337_v53  ;;  %v2620_v7 = vrot.slane %v2590_v41, %v4342_v8  ;;  %v2628_v9 = vrot.slane %v2590_v41, %v4348_v59  ;;  %v2942_v41 = vld [vmem:[%s5346_s4 + $0x10] sm:$0xff] }
 0x734   :  { %v2637_v56 = vmul.f32 %v2620_v7, %v5076_v45  ;;  %v2638_v3 = vmul.f32 %v2616_v63, %v2603_v42  ;;  %v2980_v45 = vld [vmem:[%s5346_s4 + $0x140] sm:$0xff] }
 0x736   :  { %v5153_v47 = vadd.f32 %v2638_v3, %v2637_v56 }
 0x738   :  { %3236 = vtanh.f32 %v5153_v47 }
 0x745   :  { %v3237_v57 = vpop.eup %3236 }
 0x746   :  { %v2641_v44 = vmul.f32 %v3237_v57, %v2628_v9 }
 0x748   :  { %2642 = vst [vmem:[#allocation5 + $0x6] sm:$0x1] %v2641_v44  ;;  %2774 = vmatmul.mubr.f32.vlgmr.msra.gmra.mxu0 %v2641_v44  ;;  %2845 = vmatmul.mubr.f32.vlgmr.msra.gmra.mxu1 %v2641_v44 }
 0x749   :  { %3069 = vmatprep.mubr.f32.mxu0 %v5624_v23  ;;  %3006 = vmatpush1.msra.mxu0 %v2985_v43 }
 0x74a   :  { %3171 = vmatpush3.msra.mxu1 %v2987_v11  ;;  %3007 = vmatprep.subr.mxu0 %v2983_v48  ;;  %v2644_v11 = vld [vmem:[#allocation4 + $0x7] ss:$8 sm:$0xf] }
 0x74b   :  { %3172 = vmatprep.subr.mxu1 %v5624_v23  ;;  %3008 = vmatpush1.msra.mxu0 %v2982_v31 }
 0x74c   :  { %3173 = vmatpush3.msra.mxu1 %v2984_v46  ;;  %3009 = vmatprep.subr.mxu0 %v2980_v45 }
 0x74d   :  { %3174 = vmatprep.subr.mxu1 %v5624_v23  ;;  %3010 = vmatpush1.msra.mxu0 %v2979_v10 }
 0x74e   :  { %3175 = vmatpush3.msra.mxu1 %v2981_v54  ;;  %3011 = vmatprep.subr.mxu0 %v2977_v55 }
 0x74f   :  { %3176 = vmatprep.subr.mxu1 %v5624_v23  ;;  %3012 = vmatpush1.msra.mxu0 %v2976_v52 }
 0x750   :  { %3177 = vmatpush3.msra.mxu1 %v2978_v0  ;;  %3013 = vmatprep.subr.mxu0 %v2974_v51 }
 0x751   :  { %3178 = vmatprep.subr.mxu1 %v5624_v23  ;;  %3014 = vmatpush1.msra.mxu0 %v2973_v1 }
 0x752   :  { %3179 = vmatpush3.msra.mxu1 %v2975_v49  ;;  %3015 = vmatprep.subr.mxu0 %v2971_v61  ;;  %v2988_v61 = vld [vmem:[%s5347_s5] sm:$0x7] }
 0x753   :  { %3180 = vmatprep.subr.mxu1 %v5624_v23  ;;  %3016 = vmatpush1.msra.mxu0 %v2970_v12  ;;  %v2993_v12 = vrot.slane %v2988_v61, %v4337_v53 }
 0x754   :  { %3181 = vmatpush3.msra.mxu1 %v2972_v62  ;;  %3017 = vmatprep.subr.mxu0 %v2968_v13  ;;  %v2997_v62 = vrot.slane %v2988_v61, %v4342_v8 }
 0x755   :  { %3182 = vmatprep.subr.mxu1 %v5624_v23  ;;  %3018 = vmatpush1.msra.mxu0 %v2967_v14 }
 0x756   :  { %3183 = vmatpush3.msra.mxu1 %v2969_v4  ;;  %3019 = vmatprep.subr.mxu0 %v2965_v15 }
 0x757   :  { %3184 = vmatprep.subr.mxu1 %v5624_v23  ;;  %3020 = vmatpush1.msra.mxu0 %v2964_v6 }
 0x758   :  { %3185 = vmatpush3.msra.mxu1 %v2966_v2  ;;  %3021 = vmatprep.subr.mxu0 %v2962_v16 }
 0x759   :  { %3186 = vmatprep.subr.mxu1 %v5624_v23  ;;  %3022 = vmatpush1.msra.mxu0 %v2961_v17 }
 0x75a   :  { %3187 = vmatpush3.msra.mxu1 %v2963_v18  ;;  %3023 = vmatprep.subr.mxu0 %v2959_v19 }
 0x75b   :  { %3188 = vmatprep.subr.mxu1 %v5624_v23  ;;  %3024 = vmatpush1.msra.mxu0 %v2958_v20 }
 0x75c   :  { %3189 = vmatpush3.msra.mxu1 %v2960_v21  ;;  %3025 = vmatprep.subr.mxu0 %v2956_v22 }
 0x75d   :  { %3190 = vmatprep.subr.mxu1 %v5624_v23  ;;  %3026 = vmatpush1.msra.mxu0 %v2955_v24 }
 0x75e   :  { %3191 = vmatpush3.msra.mxu1 %v2957_v25  ;;  %3027 = vmatprep.subr.mxu0 %v2953_v26 }
 0x75f   :  { %3192 = vmatprep.subr.mxu1 %v5624_v23  ;;  %3028 = vmatpush1.msra.mxu0 %v2952_v27 }
 0x760   :  { %3193 = vmatpush3.msra.mxu1 %v2954_v28  ;;  %3029 = vmatprep.subr.mxu0 %v2950_v29 }
 0x761   :  { %3194 = vmatprep.subr.mxu1 %v5624_v23  ;;  %3030 = vmatpush1.msra.mxu0 %v2949_v30 }
 0x762   :  { %3195 = vmatpush3.msra.mxu1 %v2951_v32  ;;  %3031 = vmatprep.subr.mxu0 %v2947_v33 }
 0x763   :  { %3196 = vmatprep.subr.mxu1 %v5624_v23  ;;  %3032 = vmatpush1.msra.mxu0 %v2946_v34 }
 0x764   :  { %3197 = vmatpush3.msra.mxu1 %v2948_v35  ;;  %3033 = vmatprep.subr.mxu0 %v2944_v36 }
 0x765   :  { %3198 = vmatprep.subr.mxu1 %v5624_v23  ;;  %3034 = vmatpush1.msra.mxu0 %v2943_v37 }
 0x766   :  { %3199 = vmatpush3.msra.mxu1 %v2945_v38  ;;  %3035 = vmatprep.subr.mxu0 %v2941_v39 }
 0x767   :  { %3200 = vmatprep.subr.mxu1 %v5624_v23  ;;  %3036 = vmatpush1.msra.mxu0 %v2940_v40 }
 0x768   :  { %3201 = vmatpush3.msra.mxu1 %v2942_v41  ;;  %3202 = vmatprep.mubr.msk.f32.mxu1 %vm3246_vm0, %v5624_v23 }
 0x808   :  { %v2775_v42 = vpop.f32.mrf.mxu0  ;;  %v2846_v63 = vpop.f32.mrf.mxu1 }
 0x80a   :  { %v2777_v7 = vpop.f32.mrf.mxu0  ;;  %v2848_v56 = vpop.f32.mrf.mxu1 }
 0x80b   :  { %v2855_v3 = vcombine.low %v2775_v42, %v2777_v7  ;;  %v2856_v9 = vcombine.low %v2846_v63, %v2848_v56 }
 0x80d   :  { %v2863_v57 = vrot.slane %v2855_v3, %v4352_v50  ;;  %v2870_v44 = vrot.slane %v2856_v9, %v4352_v50 }
 0x80f   :  { %v2871_v58 = vcombine.low %v2863_v57, %v2870_v44 }
 0x811   :  { %v2878_v43 = vrot.slane %v2871_v58, %v4352_v50 }
 0x813   :  { %v2880_v48 = vadd.f32 %v2878_v43, %v2644_v11 }
 0x815   :  { %v2881_v31 = vmul.f32 %v2880_v48, %v4360_v5 }
 0x817   :  { %3238 = vtanh.f32 %v2881_v31 }
 0x824   :  { %v3239_v46 = vpop.eup %3238 }
 0x825   :  { %v2883_v23 = vadd.f32 1.0, %v3239_v46  ;;  %v2897_v10 = vrot.slane %v3239_v46, %v4346_v60 }
 0x827   :  { %v2884_v45 = vmul.f32 0.5, %v2883_v23 }
 0x829   :  { %v2910_v54 = vrot.slane %v2884_v45, %v4337_v53  ;;  %v2914_v55 = vrot.slane %v2884_v45, %v4342_v8  ;;  %v2922_v50 = vrot.slane %v2884_v45, %v4348_v59 }
 0x82b   :  { %v2931_v52 = vmul.f32 %v2914_v55, %v5153_v47  ;;  %v2932_v0 = vmul.f32 %v2910_v54, %v2897_v10  ;;  %v3001_v47 = vrot.slane %v2988_v61, %v4346_v60 }
 0x82d   :  { %v2933_v51 = vadd.f32 %v2932_v0, %v2931_v52 }
 0x82f   :  { %3240 = vtanh.f32 %v2933_v51  ;;  %2938 = vst [vmem:[#allocation3] sm:$0x1] %v2933_v51 }
 0x83c   :  { %v3241_v1 = vpop.eup %3240 }
 0x83d   :  { %v2935_v5 = vmul.f32 %v3241_v1, %v2922_v50 }
 0x83f   :  { %2936 = vst [vmem:[#allocation5 + $0x7] sm:$0x1] %v2935_v5  ;;  %2937 = vst [vmem:[#allocation2] sm:$0x1] %v2935_v5 }
 0x846   :  { %v2939_v49 = vld [vmem:[#allocation5] sm:$0xff] }
 0x847   :  { %3070 = vmatmul.mubr.f32.vlgmr.msra.gmra.mxu0 %v2939_v49  ;;  %3203 = vmatmul.mubr.f32.vlgmr.msra.gmra.mxu1 %v2939_v49 }
 0x907   :  { %v3071_v13 = vpop.f32.mrf.mxu0  ;;  %v3142_v14 = vpop.f32.mrf.mxu1 }
 0x908   :  { %v3072_v59 = vadd.f32 %v3071_v13, %v2993_v12  ;;  %v3143_v4 = vadd.f32 %v3142_v14, %v3001_v47 }
 0x909   :  { %v3073_v15 = vpop.f32.mrf.mxu0  ;;  %v3204_v6 = vpop.f32.mrf.mxu1 }
 0x90a   :  { %3146 = vst [vmem:[%s5348_s6] sm:$0xff] %v3072_v59  ;;  %3148 = vst [vmem:[%s5348_s6 + $0x10] sm:$0xff] %v3143_v4  ;;  %v3074_v2 = vadd.f32 %v3073_v15, %v2997_v62 }
 0x90c   :  { %3147 = vst [vmem:[%s5348_s6 + $0x8] sm:$0xff] %v3074_v2 }

</bundles_post_ra>
